<compile_context>
chip_gen: v6e
topology: v6e:2x2x1
jax: 0.10.0
libtpu: 0.0.40
codegen_flags: <defaults>
</compile_context>

<pallas_src>
import jax
import jax.numpy as jnp
from jax.experimental import pallas as pl
from jax.experimental.pallas import tpu as pltpu

KERNEL_SIZE = 4
STRIDE = 2
PADDING = 1
BN_EPS = 1e-5


def conv_bn_relu_kernel(w_ref, z_ref, gb_ref, o_ref, sum_ref, sumsq_ref):
    """One grid step = (phase, sample).

    w_ref:     [4, OC, CP]       bf16  tap-major weights (CP = 4*C_in phase channels)
    z_ref:     [OH+1, CP, OW+1]  bf16  space-to-depth padded input for this sample
    gb_ref:    [OC, 2]           f32   (gamma, beta), resident block
    o_ref:     [OC, OH, OW]      f32   NCHW output block for this sample
    sum_ref:   [OC, 1]           f32   running per-channel sum        (VMEM scratch)
    sumsq_ref: [OC, 1]           f32   running per-channel sum-of-sq  (VMEM scratch)
    """
    phase = pl.program_id(0)
    sample = pl.program_id(1)
    oc, oh, ow = o_ref.shape

    @pl.when(jnp.logical_and(phase == 0, sample == 0))
    def _init_stats():
        sum_ref[...] = jnp.zeros_like(sum_ref)
        sumsq_ref[...] = jnp.zeros_like(sumsq_ref)

    # ---- fused-im2col conv --------------------------------------------------
    # The stride-2 4x4 conv is a stride-1 2x2 conv over 16 phase channels, so each
    # output row is 4 tap matmuls [OC, CP] @ [CP, OW] over *contiguous* slices of
    # z_ref.  No [K, M] patch tensor ever exists; f32 MXU accumulation.
    w_tap = [w_ref[t] for t in range(4)]                       # each [OC, CP] bf16
    left = [z_ref[r, :, 0:ow] for r in range(oh + 1)]          # column tap aj = 0
    right = [z_ref[r, :, 1:ow + 1] for r in range(oh + 1)]     # column tap aj = 1
    rows = []
    for u in range(oh):
        acc = jnp.dot(w_tap[0], left[u], preferred_element_type=jnp.float32)
        acc = acc + jnp.dot(w_tap[1], right[u], preferred_element_type=jnp.float32)
        acc = acc + jnp.dot(w_tap[2], left[u + 1], preferred_element_type=jnp.float32)
        acc = acc + jnp.dot(w_tap[3], right[u + 1], preferred_element_type=jnp.float32)
        rows.append(acc)                                       # [OC, OW] f32

    # ---- phase 0: stream BatchNorm statistics (sum / sum-of-squares) --------
    @pl.when(phase == 0)
    def _accumulate_stats():
        s = sum_ref[...]
        sq = sumsq_ref[...]
        for row in rows:
            s = s + jnp.sum(row, axis=1, keepdims=True)
            sq = sq + jnp.sum(row * row, axis=1, keepdims=True)
        sum_ref[...] = s
        sumsq_ref[...] = sq

    # ---- phase 1: single-pass normalize + ReLU + direct NCHW store ----------
    @pl.when(phase == 1)
    def _normalize_store():
        inv_cnt = 1.0 / (pl.num_programs(1) * oh * ow)
        mean = sum_ref[...] * inv_cnt                          # [OC, 1]
        var = sumsq_ref[...] * inv_cnt - mean * mean           # biased var, single pass
        scale = gb_ref[:, 0:1] * jax.lax.rsqrt(var + BN_EPS)   # gamma folded into rsqrt
        shift = gb_ref[:, 1:2] - mean * scale                  # conv bias cancelled by BN
        for u in range(oh):
            o_ref[:, u, :] = jnp.maximum(rows[u] * scale + shift, 0.0)


@jax.jit
def conv_block_forward(x, weight, bias, gamma, beta):
    """Conv2d(k4,s2,p1,bias) -> BatchNorm2d (training) -> ReLU.  NCHW in / NCHW out."""
    n, c, h, w = x.shape
    oc = weight.shape[0]
    oh = (h + 2 * PADDING - KERNEL_SIZE) // STRIDE + 1
    ow = (w + 2 * PADDING - KERNEL_SIZE) // STRIDE + 1
    up, vp = oh + 1, ow + 1        # holds for kernel=4, stride=2, pad=1, even H/W
    cp = 4 * c

    # Conv bias is cancelled exactly by training-mode BatchNorm's mean subtraction,
    # so it is never touched (guard: valid only for norm='batch' training mode).
    del bias

    # Input-sized space-to-depth (stays fused in XLA, ~1.3x input bytes -- replaces the
    # 4x-amplified HBM-materialized im2col patch tensor of the previous version).
    xp = jnp.pad(x, ((0, 0), (0, 0), (PADDING, PADDING), (PADDING, PADDING)))
    z = xp.reshape(n, c, up, 2, vp, 2)           # (n, c, u, pi, v, pj)
    z = z.transpose(0, 2, 1, 3, 5, 4)            # (n, u, c, pi, pj, v)
    z = z.reshape(n, up, cp, vp).astype(jnp.bfloat16)     # bf16 MXU operand (item 5)

    # Weight [OC, C, 4, 4] -> tap-major [4, OC, CP]; t = ai*2+aj, cp = c*4+pi*2+pj.
    w2 = weight.reshape(oc, c, 2, 2, 2, 2)       # (oc, c, ai, pi, aj, pj)
    w2 = w2.transpose(2, 4, 0, 1, 3, 5)          # (ai, aj, oc, c, pi, pj)
    w_taps = w2.reshape(4, oc, cp).astype(jnp.bfloat16)

    # gamma/beta as one tiny resident VMEM block (constant block index -> one DMA total).
    gb = jnp.stack([gamma, beta], axis=1).astype(jnp.float32)   # [OC, 2]

    # grid = (phase, sample).  Output index_map i*p keeps the output block parked on
    # block 0 during the stats phase, so no garbage block is flushed; every block is
    # fully written exactly once in phase 1.  Default scoped VMEM is ample here; at
    # real sizes budget (z_block + out_block)*2 double-buffers under ~48 MiB for v7x.
    out = pl.pallas_call(
        conv_bn_relu_kernel,
        out_shape=jax.ShapeDtypeStruct((n, oc, oh, ow), jnp.float32),
        grid=(2, n),
        in_specs=[
            pl.BlockSpec((4, oc, cp), lambda p, i: (0, 0, 0)),          # weights, resident
            pl.BlockSpec((None, up, cp, vp), lambda p, i: (i, 0, 0, 0)),  # per-sample z
            pl.BlockSpec((oc, 2), lambda p, i: (0, 0)),                 # gamma/beta
        ],
        out_specs=pl.BlockSpec((None, oc, oh, ow), lambda p, i: (i * p, 0, 0, 0)),
        scratch_shapes=[
            pltpu.VMEM((oc, 1), jnp.float32),   # per-channel sum
            pltpu.VMEM((oc, 1), jnp.float32),   # per-channel sum of squares
        ],
        compiler_params=pltpu.CompilerParams(
            # Both axes carry state (phase ordering / shared BN-stats scratch).
            dimension_semantics=("arbitrary", "arbitrary")),
    )(w_taps, z, gb)
    return out


def reference_forward(x, weight, bias, gamma, beta, conv_dtype=jnp.float32):
    """Pure-JAX reference: conv (+bias) -> training-mode BN -> ReLU, all math in f32.

    conv_dtype only quantizes the conv operands (to mirror the kernel's bf16 MXU
    operands when set to bfloat16); accumulation and BN stay f32.
    """
    xq = x.astype(conv_dtype).astype(jnp.float32)
    wq = weight.astype(conv_dtype).astype(jnp.float32)
    y = jax.lax.conv_general_dilated(
        xq, wq, window_strides=(STRIDE, STRIDE),
        padding=((PADDING, PADDING), (PADDING, PADDING)),
        dimension_numbers=("NCHW", "OIHW", "NCHW"))
    y = y + bias.reshape(1, -1, 1, 1)
    mean = jnp.mean(y, axis=(0, 2, 3), keepdims=True)
    var = jnp.mean((y - mean) ** 2, axis=(0, 2, 3), keepdims=True)
    y = (y - mean) * jax.lax.rsqrt(var + BN_EPS)
    y = y * gamma.reshape(1, -1, 1, 1) + beta.reshape(1, -1, 1, 1)
    return jnp.maximum(y, 0.0)


if __name__ == "__main__":
    key = jax.random.PRNGKey(0)
    kx, kw, kb, kg, kbe = jax.random.split(key, 5)

    N, C_IN, C_OUT, H, W = 2, 4, 8, 16, 16

    x = jax.random.normal(kx, (N, C_IN, H, W), dtype=jnp.float32)
    weight = 0.1 * jax.random.normal(
        kw, (C_OUT, C_IN, KERNEL_SIZE, KERNEL_SIZE), dtype=jnp.float32)
    bias = 0.1 * jax.random.normal(kb, (C_OUT,), dtype=jnp.float32)
    gamma = 1.0 + 0.1 * jax.random.normal(kg, (C_OUT,), dtype=jnp.float32)
    beta = 0.1 * jax.random.normal(kbe, (C_OUT,), dtype=jnp.float32)

    out = jax.block_until_ready(conv_block_forward(x, weight, bias, gamma, beta))
    assert out.shape == (N, C_OUT, H // 2, W // 2)

    # Strict check: reference with the SAME bf16-quantized conv operands as the kernel
    # -> isolates the fused-im2col / two-phase-BN / ReLU logic (f32-accumulation level).
    ref_bf16 = reference_forward(x, weight, bias, gamma, beta, conv_dtype=jnp.bfloat16)
    assert jnp.allclose(out, ref_bf16, atol=1e-3, rtol=1e-3), "mismatch vs bf16-operand reference"

    # True f32 module semantics: only the (review-requested) bf16 MXU-operand
    # quantization separates the two, so the tolerance is bf16-scaled.
    ref_f32 = reference_forward(x, weight, bias, gamma, beta, conv_dtype=jnp.float32)
    assert jnp.allclose(out, ref_f32, atol=2e-2, rtol=2e-2), "mismatch vs f32 reference"

    print("KERNEL_OK")
</pallas_src>

<mosaic_0001>
module attributes {stable_mosaic.version = 11 : i64} {
  func.func @conv_bn_relu_kernel(%arg0: i32, %arg1: i32, %arg2: memref<4x8x16xbf16, #tpu.memory_space<vmem>>, %arg3: memref<1x9x16x9xbf16, #tpu.memory_space<vmem>>, %arg4: memref<8x2xf32, #tpu.memory_space<vmem>>, %arg5: memref<1x8x8x8xf32, #tpu.memory_space<vmem>>, %arg6: memref<8x1xf32, #tpu.memory_space<vmem>>, %arg7: memref<8x1xf32, #tpu.memory_space<vmem>>) attributes {dimension_semantics = [#tpu.dimension_semantics<arbitrary>, #tpu.dimension_semantics<arbitrary>], iteration_bounds = array<i64: 2, 2>, scalar_prefetch = 0 : i64, scratch_operands = 2 : i64, tpu.core_type = #tpu.core_type<tc>, window_params = [{pipeline_mode = #tpu.pipeline_mode<synchronous>, transform_indices = @transform_0, window_bounds = array<i64: 4, 8, 16>}, {transform_indices = @transform_1, window_bounds = array<i64: 1, 9, 16, 9>}, {pipeline_mode = #tpu.pipeline_mode<synchronous>, transform_indices = @transform_2, window_bounds = array<i64: 8, 2>}, {transform_indices = @transform_3, window_bounds = array<i64: 1, 8, 8, 8>}]} {
    %c0_i32 = arith.constant 0 : i32
    %0 = arith.cmpi eq, %arg0, %c0_i32 : i32
    %c0_i32_0 = arith.constant 0 : i32
    %1 = arith.cmpi eq, %arg1, %c0_i32_0 : i32
    %2 = arith.andi %0, %1 : i1
    %3 = arith.extui %2 : i1 to i32
    %c0_i32_1 = arith.constant 0 : i32
    %4 = arith.cmpi ne, %3, %c0_i32_1 : i32
    scf.if %4 {
      %cst_111 = arith.constant 0.000000e+00 : f32
      %111 = vector.broadcast %cst_111 : f32 to vector<8x1xf32>
      %c0_112 = arith.constant 0 : index
      %c0_113 = arith.constant 0 : index
      %112 = vector.load %arg6[%c0_112, %c0_113] : memref<8x1xf32, #tpu.memory_space<vmem>>, vector<8x1xf32>
      tpu.vector_store %arg6[%c0_112, %c0_113], %111 {strides = array<i32>} : memref<8x1xf32, #tpu.memory_space<vmem>>, vector<8x1xf32>,
      %cst_114 = arith.constant 0.000000e+00 : f32
      %113 = vector.broadcast %cst_114 : f32 to vector<8x1xf32>
      %c0_115 = arith.constant 0 : index
      %c0_116 = arith.constant 0 : index
      %114 = vector.load %arg7[%c0_115, %c0_116] : memref<8x1xf32, #tpu.memory_space<vmem>>, vector<8x1xf32>
      tpu.vector_store %arg7[%c0_115, %c0_116], %113 {strides = array<i32>} : memref<8x1xf32, #tpu.memory_space<vmem>>, vector<8x1xf32>,
    } else {
    }
    %c0 = arith.constant 0 : index
    %c0_2 = arith.constant 0 : index
    %c0_3 = arith.constant 0 : index
    %5 = vector.load %arg2[%c0, %c0_2, %c0_3] : memref<4x8x16xbf16, #tpu.memory_space<vmem>>, vector<1x8x16xbf16>
    %6 = vector.shape_cast %5 : vector<1x8x16xbf16> to vector<8x16xbf16>
    %c1 = arith.constant 1 : index
    %c0_4 = arith.constant 0 : index
    %c0_5 = arith.constant 0 : index
    %7 = vector.load %arg2[%c1, %c0_4, %c0_5] : memref<4x8x16xbf16, #tpu.memory_space<vmem>>, vector<1x8x16xbf16>
    %8 = vector.shape_cast %7 : vector<1x8x16xbf16> to vector<8x16xbf16>
    %c2 = arith.constant 2 : index
    %c0_6 = arith.constant 0 : index
    %c0_7 = arith.constant 0 : index
    %9 = vector.load %arg2[%c2, %c0_6, %c0_7] : memref<4x8x16xbf16, #tpu.memory_space<vmem>>, vector<1x8x16xbf16>
    %10 = vector.shape_cast %9 : vector<1x8x16xbf16> to vector<8x16xbf16>
    %c3 = arith.constant 3 : index
    %c0_8 = arith.constant 0 : index
    %c0_9 = arith.constant 0 : index
    %11 = vector.load %arg2[%c3, %c0_8, %c0_9] : memref<4x8x16xbf16, #tpu.memory_space<vmem>>, vector<1x8x16xbf16>
    %12 = vector.shape_cast %11 : vector<1x8x16xbf16> to vector<8x16xbf16>
    %c0_10 = arith.constant 0 : index
    %c0_11 = arith.constant 0 : index
    %c0_12 = arith.constant 0 : index
    %c0_13 = arith.constant 0 : index
    %13 = vector.load %arg3[%c0_10, %c0_11, %c0_12, %c0_13] : memref<1x9x16x9xbf16, #tpu.memory_space<vmem>>, vector<1x1x16x8xbf16>
    %14 = vector.shape_cast %13 : vector<1x1x16x8xbf16> to vector<16x8xbf16>
    %c0_14 = arith.constant 0 : index
    %c1_15 = arith.constant 1 : index
    %c0_16 = arith.constant 0 : index
    %c0_17 = arith.constant 0 : index
    %15 = vector.load %arg3[%c0_14, %c1_15, %c0_16, %c0_17] : memref<1x9x16x9xbf16, #tpu.memory_space<vmem>>, vector<1x1x16x8xbf16>
    %16 = vector.shape_cast %15 : vector<1x1x16x8xbf16> to vector<16x8xbf16>
    %c0_18 = arith.constant 0 : index
    %c2_19 = arith.constant 2 : index
    %c0_20 = arith.constant 0 : index
    %c0_21 = arith.constant 0 : index
    %17 = vector.load %arg3[%c0_18, %c2_19, %c0_20, %c0_21] : memref<1x9x16x9xbf16, #tpu.memory_space<vmem>>, vector<1x1x16x8xbf16>
    %18 = vector.shape_cast %17 : vector<1x1x16x8xbf16> to vector<16x8xbf16>
    %c0_22 = arith.constant 0 : index
    %c3_23 = arith.constant 3 : index
    %c0_24 = arith.constant 0 : index
    %c0_25 = arith.constant 0 : index
    %19 = vector.load %arg3[%c0_22, %c3_23, %c0_24, %c0_25] : memref<1x9x16x9xbf16, #tpu.memory_space<vmem>>, vector<1x1x16x8xbf16>
    %20 = vector.shape_cast %19 : vector<1x1x16x8xbf16> to vector<16x8xbf16>
    %c0_26 = arith.constant 0 : index
    %c4 = arith.constant 4 : index
    %c0_27 = arith.constant 0 : index
    %c0_28 = arith.constant 0 : index
    %21 = vector.load %arg3[%c0_26, %c4, %c0_27, %c0_28] : memref<1x9x16x9xbf16, #tpu.memory_space<vmem>>, vector<1x1x16x8xbf16>
    %22 = vector.shape_cast %21 : vector<1x1x16x8xbf16> to vector<16x8xbf16>
    %c0_29 = arith.constant 0 : index
    %c5 = arith.constant 5 : index
    %c0_30 = arith.constant 0 : index
    %c0_31 = arith.constant 0 : index
    %23 = vector.load %arg3[%c0_29, %c5, %c0_30, %c0_31] : memref<1x9x16x9xbf16, #tpu.memory_space<vmem>>, vector<1x1x16x8xbf16>
    %24 = vector.shape_cast %23 : vector<1x1x16x8xbf16> to vector<16x8xbf16>
    %c0_32 = arith.constant 0 : index
    %c6 = arith.constant 6 : index
    %c0_33 = arith.constant 0 : index
    %c0_34 = arith.constant 0 : index
    %25 = vector.load %arg3[%c0_32, %c6, %c0_33, %c0_34] : memref<1x9x16x9xbf16, #tpu.memory_space<vmem>>, vector<1x1x16x8xbf16>
    %26 = vector.shape_cast %25 : vector<1x1x16x8xbf16> to vector<16x8xbf16>
    %c0_35 = arith.constant 0 : index
    %c7 = arith.constant 7 : index
    %c0_36 = arith.constant 0 : index
    %c0_37 = arith.constant 0 : index
    %27 = vector.load %arg3[%c0_35, %c7, %c0_36, %c0_37] : memref<1x9x16x9xbf16, #tpu.memory_space<vmem>>, vector<1x1x16x8xbf16>
    %28 = vector.shape_cast %27 : vector<1x1x16x8xbf16> to vector<16x8xbf16>
    %c0_38 = arith.constant 0 : index
    %c8 = arith.constant 8 : index
    %c0_39 = arith.constant 0 : index
    %c0_40 = arith.constant 0 : index
    %29 = vector.load %arg3[%c0_38, %c8, %c0_39, %c0_40] : memref<1x9x16x9xbf16, #tpu.memory_space<vmem>>, vector<1x1x16x8xbf16>
    %30 = vector.shape_cast %29 : vector<1x1x16x8xbf16> to vector<16x8xbf16>
    %c0_41 = arith.constant 0 : index
    %c0_42 = arith.constant 0 : index
    %c0_43 = arith.constant 0 : index
    %c1_44 = arith.constant 1 : index
    %31 = vector.load %arg3[%c0_41, %c0_42, %c0_43, %c1_44] : memref<1x9x16x9xbf16, #tpu.memory_space<vmem>>, vector<1x1x16x8xbf16>
    %32 = vector.shape_cast %31 : vector<1x1x16x8xbf16> to vector<16x8xbf16>
    %c0_45 = arith.constant 0 : index
    %c1_46 = arith.constant 1 : index
    %c0_47 = arith.constant 0 : index
    %c1_48 = arith.constant 1 : index
    %33 = vector.load %arg3[%c0_45, %c1_46, %c0_47, %c1_48] : memref<1x9x16x9xbf16, #tpu.memory_space<vmem>>, vector<1x1x16x8xbf16>
    %34 = vector.shape_cast %33 : vector<1x1x16x8xbf16> to vector<16x8xbf16>
    %c0_49 = arith.constant 0 : index
    %c2_50 = arith.constant 2 : index
    %c0_51 = arith.constant 0 : index
    %c1_52 = arith.constant 1 : index
    %35 = vector.load %arg3[%c0_49, %c2_50, %c0_51, %c1_52] : memref<1x9x16x9xbf16, #tpu.memory_space<vmem>>, vector<1x1x16x8xbf16>
    %36 = vector.shape_cast %35 : vector<1x1x16x8xbf16> to vector<16x8xbf16>
    %c0_53 = arith.constant 0 : index
    %c3_54 = arith.constant 3 : index
    %c0_55 = arith.constant 0 : index
    %c1_56 = arith.constant 1 : index
    %37 = vector.load %arg3[%c0_53, %c3_54, %c0_55, %c1_56] : memref<1x9x16x9xbf16, #tpu.memory_space<vmem>>, vector<1x1x16x8xbf16>
    %38 = vector.shape_cast %37 : vector<1x1x16x8xbf16> to vector<16x8xbf16>
    %c0_57 = arith.constant 0 : index
    %c4_58 = arith.constant 4 : index
    %c0_59 = arith.constant 0 : index
    %c1_60 = arith.constant 1 : index
    %39 = vector.load %arg3[%c0_57, %c4_58, %c0_59, %c1_60] : memref<1x9x16x9xbf16, #tpu.memory_space<vmem>>, vector<1x1x16x8xbf16>
    %40 = vector.shape_cast %39 : vector<1x1x16x8xbf16> to vector<16x8xbf16>
    %c0_61 = arith.constant 0 : index
    %c5_62 = arith.constant 5 : index
    %c0_63 = arith.constant 0 : index
    %c1_64 = arith.constant 1 : index
    %41 = vector.load %arg3[%c0_61, %c5_62, %c0_63, %c1_64] : memref<1x9x16x9xbf16, #tpu.memory_space<vmem>>, vector<1x1x16x8xbf16>
    %42 = vector.shape_cast %41 : vector<1x1x16x8xbf16> to vector<16x8xbf16>
    %c0_65 = arith.constant 0 : index
    %c6_66 = arith.constant 6 : index
    %c0_67 = arith.constant 0 : index
    %c1_68 = arith.constant 1 : index
    %43 = vector.load %arg3[%c0_65, %c6_66, %c0_67, %c1_68] : memref<1x9x16x9xbf16, #tpu.memory_space<vmem>>, vector<1x1x16x8xbf16>
    %44 = vector.shape_cast %43 : vector<1x1x16x8xbf16> to vector<16x8xbf16>
    %c0_69 = arith.constant 0 : index
    %c7_70 = arith.constant 7 : index
    %c0_71 = arith.constant 0 : index
    %c1_72 = arith.constant 1 : index
    %45 = vector.load %arg3[%c0_69, %c7_70, %c0_71, %c1_72] : memref<1x9x16x9xbf16, #tpu.memory_space<vmem>>, vector<1x1x16x8xbf16>
    %46 = vector.shape_cast %45 : vector<1x1x16x8xbf16> to vector<16x8xbf16>
    %c0_73 = arith.constant 0 : index
    %c8_74 = arith.constant 8 : index
    %c0_75 = arith.constant 0 : index
    %c1_76 = arith.constant 1 : index
    %47 = vector.load %arg3[%c0_73, %c8_74, %c0_75, %c1_76] : memref<1x9x16x9xbf16, #tpu.memory_space<vmem>>, vector<1x1x16x8xbf16>
    %48 = vector.shape_cast %47 : vector<1x1x16x8xbf16> to vector<16x8xbf16>
    %cst = arith.constant dense<0.000000e+00> : vector<8x8xf32>
    %49 = tpu.matmul %6, %14, %cst {dimension_numbers = #tpu.dot_dimension_numbers<[1], [0], [0], [1], [0, 0, 1, 1], [], []>} : vector<8x16xbf16>, vector<16x8xbf16>, vector<8x8xf32> -> vector<8x8xf32>
    %cst_77 = arith.constant dense<0.000000e+00> : vector<8x8xf32>
    %50 = tpu.matmul %8, %32, %cst_77 {dimension_numbers = #tpu.dot_dimension_numbers<[1], [0], [0], [1], [0, 0, 1, 1], [], []>} : vector<8x16xbf16>, vector<16x8xbf16>, vector<8x8xf32> -> vector<8x8xf32>
    %51 = arith.addf %49, %50 : vector<8x8xf32>
    %cst_78 = arith.constant dense<0.000000e+00> : vector<8x8xf32>
    %52 = tpu.matmul %10, %16, %cst_78 {dimension_numbers = #tpu.dot_dimension_numbers<[1], [0], [0], [1], [0, 0, 1, 1], [], []>} : vector<8x16xbf16>, vector<16x8xbf16>, vector<8x8xf32> -> vector<8x8xf32>
    %53 = arith.addf %51, %52 : vector<8x8xf32>
    %cst_79 = arith.constant dense<0.000000e+00> : vector<8x8xf32>
    %54 = tpu.matmul %12, %34, %cst_79 {dimension_numbers = #tpu.dot_dimension_numbers<[1], [0], [0], [1], [0, 0, 1, 1], [], []>} : vector<8x16xbf16>, vector<16x8xbf16>, vector<8x8xf32> -> vector<8x8xf32>
    %55 = arith.addf %53, %54 : vector<8x8xf32>
    %cst_80 = arith.constant dense<0.000000e+00> : vector<8x8xf32>
    %56 = tpu.matmul %6, %16, %cst_80 {dimension_numbers = #tpu.dot_dimension_numbers<[1], [0], [0], [1], [0, 0, 1, 1], [], []>} : vector<8x16xbf16>, vector<16x8xbf16>, vector<8x8xf32> -> vector<8x8xf32>
    %cst_81 = arith.constant dense<0.000000e+00> : vector<8x8xf32>
    %57 = tpu.matmul %8, %34, %cst_81 {dimension_numbers = #tpu.dot_dimension_numbers<[1], [0], [0], [1], [0, 0, 1, 1], [], []>} : vector<8x16xbf16>, vector<16x8xbf16>, vector<8x8xf32> -> vector<8x8xf32>
    %58 = arith.addf %56, %57 : vector<8x8xf32>
    %cst_82 = arith.constant dense<0.000000e+00> : vector<8x8xf32>
    %59 = tpu.matmul %10, %18, %cst_82 {dimension_numbers = #tpu.dot_dimension_numbers<[1], [0], [0], [1], [0, 0, 1, 1], [], []>} : vector<8x16xbf16>, vector<16x8xbf16>, vector<8x8xf32> -> vector<8x8xf32>
    %60 = arith.addf %58, %59 : vector<8x8xf32>
    %cst_83 = arith.constant dense<0.000000e+00> : vector<8x8xf32>
    %61 = tpu.matmul %12, %36, %cst_83 {dimension_numbers = #tpu.dot_dimension_numbers<[1], [0], [0], [1], [0, 0, 1, 1], [], []>} : vector<8x16xbf16>, vector<16x8xbf16>, vector<8x8xf32> -> vector<8x8xf32>
    %62 = arith.addf %60, %61 : vector<8x8xf32>
    %cst_84 = arith.constant dense<0.000000e+00> : vector<8x8xf32>
    %63 = tpu.matmul %6, %18, %cst_84 {dimension_numbers = #tpu.dot_dimension_numbers<[1], [0], [0], [1], [0, 0, 1, 1], [], []>} : vector<8x16xbf16>, vector<16x8xbf16>, vector<8x8xf32> -> vector<8x8xf32>
    %cst_85 = arith.constant dense<0.000000e+00> : vector<8x8xf32>
    %64 = tpu.matmul %8, %36, %cst_85 {dimension_numbers = #tpu.dot_dimension_numbers<[1], [0], [0], [1], [0, 0, 1, 1], [], []>} : vector<8x16xbf16>, vector<16x8xbf16>, vector<8x8xf32> -> vector<8x8xf32>
    %65 = arith.addf %63, %64 : vector<8x8xf32>
    %cst_86 = arith.constant dense<0.000000e+00> : vector<8x8xf32>
    %66 = tpu.matmul %10, %20, %cst_86 {dimension_numbers = #tpu.dot_dimension_numbers<[1], [0], [0], [1], [0, 0, 1, 1], [], []>} : vector<8x16xbf16>, vector<16x8xbf16>, vector<8x8xf32> -> vector<8x8xf32>
    %67 = arith.addf %65, %66 : vector<8x8xf32>
    %cst_87 = arith.constant dense<0.000000e+00> : vector<8x8xf32>
    %68 = tpu.matmul %12, %38, %cst_87 {dimension_numbers = #tpu.dot_dimension_numbers<[1], [0], [0], [1], [0, 0, 1, 1], [], []>} : vector<8x16xbf16>, vector<16x8xbf16>, vector<8x8xf32> -> vector<8x8xf32>
    %69 = arith.addf %67, %68 : vector<8x8xf32>
    %cst_88 = arith.constant dense<0.000000e+00> : vector<8x8xf32>
    %70 = tpu.matmul %6, %20, %cst_88 {dimension_numbers = #tpu.dot_dimension_numbers<[1], [0], [0], [1], [0, 0, 1, 1], [], []>} : vector<8x16xbf16>, vector<16x8xbf16>, vector<8x8xf32> -> vector<8x8xf32>
    %cst_89 = arith.constant dense<0.000000e+00> : vector<8x8xf32>
    %71 = tpu.matmul %8, %38, %cst_89 {dimension_numbers = #tpu.dot_dimension_numbers<[1], [0], [0], [1], [0, 0, 1, 1], [], []>} : vector<8x16xbf16>, vector<16x8xbf16>, vector<8x8xf32> -> vector<8x8xf32>
    %72 = arith.addf %70, %71 : vector<8x8xf32>
    %cst_90 = arith.constant dense<0.000000e+00> : vector<8x8xf32>
    %73 = tpu.matmul %10, %22, %cst_90 {dimension_numbers = #tpu.dot_dimension_numbers<[1], [0], [0], [1], [0, 0, 1, 1], [], []>} : vector<8x16xbf16>, vector<16x8xbf16>, vector<8x8xf32> -> vector<8x8xf32>
    %74 = arith.addf %72, %73 : vector<8x8xf32>
    %cst_91 = arith.constant dense<0.000000e+00> : vector<8x8xf32>
    %75 = tpu.matmul %12, %40, %cst_91 {dimension_numbers = #tpu.dot_dimension_numbers<[1], [0], [0], [1], [0, 0, 1, 1], [], []>} : vector<8x16xbf16>, vector<16x8xbf16>, vector<8x8xf32> -> vector<8x8xf32>
    %76 = arith.addf %74, %75 : vector<8x8xf32>
    %cst_92 = arith.constant dense<0.000000e+00> : vector<8x8xf32>
    %77 = tpu.matmul %6, %22, %cst_92 {dimension_numbers = #tpu.dot_dimension_numbers<[1], [0], [0], [1], [0, 0, 1, 1], [], []>} : vector<8x16xbf16>, vector<16x8xbf16>, vector<8x8xf32> -> vector<8x8xf32>
    %cst_93 = arith.constant dense<0.000000e+00> : vector<8x8xf32>
    %78 = tpu.matmul %8, %40, %cst_93 {dimension_numbers = #tpu.dot_dimension_numbers<[1], [0], [0], [1], [0, 0, 1, 1], [], []>} : vector<8x16xbf16>, vector<16x8xbf16>, vector<8x8xf32> -> vector<8x8xf32>
    %79 = arith.addf %77, %78 : vector<8x8xf32>
    %cst_94 = arith.constant dense<0.000000e+00> : vector<8x8xf32>
    %80 = tpu.matmul %10, %24, %cst_94 {dimension_numbers = #tpu.dot_dimension_numbers<[1], [0], [0], [1], [0, 0, 1, 1], [], []>} : vector<8x16xbf16>, vector<16x8xbf16>, vector<8x8xf32> -> vector<8x8xf32>
    %81 = arith.addf %79, %80 : vector<8x8xf32>
    %cst_95 = arith.constant dense<0.000000e+00> : vector<8x8xf32>
    %82 = tpu.matmul %12, %42, %cst_95 {dimension_numbers = #tpu.dot_dimension_numbers<[1], [0], [0], [1], [0, 0, 1, 1], [], []>} : vector<8x16xbf16>, vector<16x8xbf16>, vector<8x8xf32> -> vector<8x8xf32>
    %83 = arith.addf %81, %82 : vector<8x8xf32>
    %cst_96 = arith.constant dense<0.000000e+00> : vector<8x8xf32>
    %84 = tpu.matmul %6, %24, %cst_96 {dimension_numbers = #tpu.dot_dimension_numbers<[1], [0], [0], [1], [0, 0, 1, 1], [], []>} : vector<8x16xbf16>, vector<16x8xbf16>, vector<8x8xf32> -> vector<8x8xf32>
    %cst_97 = arith.constant dense<0.000000e+00> : vector<8x8xf32>
    %85 = tpu.matmul %8, %42, %cst_97 {dimension_numbers = #tpu.dot_dimension_numbers<[1], [0], [0], [1], [0, 0, 1, 1], [], []>} : vector<8x16xbf16>, vector<16x8xbf16>, vector<8x8xf32> -> vector<8x8xf32>
    %86 = arith.addf %84, %85 : vector<8x8xf32>
    %cst_98 = arith.constant dense<0.000000e+00> : vector<8x8xf32>
    %87 = tpu.matmul %10, %26, %cst_98 {dimension_numbers = #tpu.dot_dimension_numbers<[1], [0], [0], [1], [0, 0, 1, 1], [], []>} : vector<8x16xbf16>, vector<16x8xbf16>, vector<8x8xf32> -> vector<8x8xf32>
    %88 = arith.addf %86, %87 : vector<8x8xf32>
    %cst_99 = arith.constant dense<0.000000e+00> : vector<8x8xf32>
    %89 = tpu.matmul %12, %44, %cst_99 {dimension_numbers = #tpu.dot_dimension_numbers<[1], [0], [0], [1], [0, 0, 1, 1], [], []>} : vector<8x16xbf16>, vector<16x8xbf16>, vector<8x8xf32> -> vector<8x8xf32>
    %90 = arith.addf %88, %89 : vector<8x8xf32>
    %cst_100 = arith.constant dense<0.000000e+00> : vector<8x8xf32>
    %91 = tpu.matmul %6, %26, %cst_100 {dimension_numbers = #tpu.dot_dimension_numbers<[1], [0], [0], [1], [0, 0, 1, 1], [], []>} : vector<8x16xbf16>, vector<16x8xbf16>, vector<8x8xf32> -> vector<8x8xf32>
    %cst_101 = arith.constant dense<0.000000e+00> : vector<8x8xf32>
    %92 = tpu.matmul %8, %44, %cst_101 {dimension_numbers = #tpu.dot_dimension_numbers<[1], [0], [0], [1], [0, 0, 1, 1], [], []>} : vector<8x16xbf16>, vector<16x8xbf16>, vector<8x8xf32> -> vector<8x8xf32>
    %93 = arith.addf %91, %92 : vector<8x8xf32>
    %cst_102 = arith.constant dense<0.000000e+00> : vector<8x8xf32>
    %94 = tpu.matmul %10, %28, %cst_102 {dimension_numbers = #tpu.dot_dimension_numbers<[1], [0], [0], [1], [0, 0, 1, 1], [], []>} : vector<8x16xbf16>, vector<16x8xbf16>, vector<8x8xf32> -> vector<8x8xf32>
    %95 = arith.addf %93, %94 : vector<8x8xf32>
    %cst_103 = arith.constant dense<0.000000e+00> : vector<8x8xf32>
    %96 = tpu.matmul %12, %46, %cst_103 {dimension_numbers = #tpu.dot_dimension_numbers<[1], [0], [0], [1], [0, 0, 1, 1], [], []>} : vector<8x16xbf16>, vector<16x8xbf16>, vector<8x8xf32> -> vector<8x8xf32>
    %97 = arith.addf %95, %96 : vector<8x8xf32>
    %cst_104 = arith.constant dense<0.000000e+00> : vector<8x8xf32>
    %98 = tpu.matmul %6, %28, %cst_104 {dimension_numbers = #tpu.dot_dimension_numbers<[1], [0], [0], [1], [0, 0, 1, 1], [], []>} : vector<8x16xbf16>, vector<16x8xbf16>, vector<8x8xf32> -> vector<8x8xf32>
    %cst_105 = arith.constant dense<0.000000e+00> : vector<8x8xf32>
    %99 = tpu.matmul %8, %46, %cst_105 {dimension_numbers = #tpu.dot_dimension_numbers<[1], [0], [0], [1], [0, 0, 1, 1], [], []>} : vector<8x16xbf16>, vector<16x8xbf16>, vector<8x8xf32> -> vector<8x8xf32>
    %100 = arith.addf %98, %99 : vector<8x8xf32>
    %cst_106 = arith.constant dense<0.000000e+00> : vector<8x8xf32>
    %101 = tpu.matmul %10, %30, %cst_106 {dimension_numbers = #tpu.dot_dimension_numbers<[1], [0], [0], [1], [0, 0, 1, 1], [], []>} : vector<8x16xbf16>, vector<16x8xbf16>, vector<8x8xf32> -> vector<8x8xf32>
    %102 = arith.addf %100, %101 : vector<8x8xf32>
    %cst_107 = arith.constant dense<0.000000e+00> : vector<8x8xf32>
    %103 = tpu.matmul %12, %48, %cst_107 {dimension_numbers = #tpu.dot_dimension_numbers<[1], [0], [0], [1], [0, 0, 1, 1], [], []>} : vector<8x16xbf16>, vector<16x8xbf16>, vector<8x8xf32> -> vector<8x8xf32>
    %104 = arith.addf %102, %103 : vector<8x8xf32>
    %c0_i32_108 = arith.constant 0 : i32
    %105 = arith.cmpi eq, %arg0, %c0_i32_108 : i32
    %106 = arith.extui %105 : i1 to i32
    %c0_i32_109 = arith.constant 0 : i32
    %107 = arith.cmpi ne, %106, %c0_i32_109 : i32
    scf.if %107 {
      %c0_111 = arith.constant 0 : index
      %c0_112 = arith.constant 0 : index
      %111 = vector.load %arg6[%c0_111, %c0_112] : memref<8x1xf32, #tpu.memory_space<vmem>>, vector<8x1xf32>
      %c0_113 = arith.constant 0 : index
      %c0_114 = arith.constant 0 : index
      %112 = vector.load %arg7[%c0_113, %c0_114] : memref<8x1xf32, #tpu.memory_space<vmem>>, vector<8x1xf32>
      %cst_115 = arith.constant dense<0.000000e+00> : vector<8xf32>
      %113 = vector.multi_reduction <add>, %55, %cst_115 [1] : vector<8x8xf32> to vector<8xf32>
      %114 = vector.shape_cast %113 : vector<8xf32> to vector<8x1xf32>
      %115 = arith.addf %111, %114 : vector<8x1xf32>
      %116 = arith.mulf %55, %55 : vector<8x8xf32>
      %cst_116 = arith.constant dense<0.000000e+00> : vector<8xf32>
      %117 = vector.multi_reduction <add>, %116, %cst_116 [1] : vector<8x8xf32> to vector<8xf32>
      %118 = vector.shape_cast %117 : vector<8xf32> to vector<8x1xf32>
      %119 = arith.addf %112, %118 : vector<8x1xf32>
      %cst_117 = arith.constant dense<0.000000e+00> : vector<8xf32>
      %120 = vector.multi_reduction <add>, %62, %cst_117 [1] : vector<8x8xf32> to vector<8xf32>
      %121 = vector.shape_cast %120 : vector<8xf32> to vector<8x1xf32>
      %122 = arith.addf %115, %121 : vector<8x1xf32>
      %123 = arith.mulf %62, %62 : vector<8x8xf32>
      %cst_118 = arith.constant dense<0.000000e+00> : vector<8xf32>
      %124 = vector.multi_reduction <add>, %123, %cst_118 [1] : vector<8x8xf32> to vector<8xf32>
      %125 = vector.shape_cast %124 : vector<8xf32> to vector<8x1xf32>
      %126 = arith.addf %119, %125 : vector<8x1xf32>
      %cst_119 = arith.constant dense<0.000000e+00> : vector<8xf32>
      %127 = vector.multi_reduction <add>, %69, %cst_119 [1] : vector<8x8xf32> to vector<8xf32>
      %128 = vector.shape_cast %127 : vector<8xf32> to vector<8x1xf32>
      %129 = arith.addf %122, %128 : vector<8x1xf32>
      %130 = arith.mulf %69, %69 : vector<8x8xf32>
      %cst_120 = arith.constant dense<0.000000e+00> : vector<8xf32>
      %131 = vector.multi_reduction <add>, %130, %cst_120 [1] : vector<8x8xf32> to vector<8xf32>
      %132 = vector.shape_cast %131 : vector<8xf32> to vector<8x1xf32>
      %133 = arith.addf %126, %132 : vector<8x1xf32>
      %cst_121 = arith.constant dense<0.000000e+00> : vector<8xf32>
      %134 = vector.multi_reduction <add>, %76, %cst_121 [1] : vector<8x8xf32> to vector<8xf32>
      %135 = vector.shape_cast %134 : vector<8xf32> to vector<8x1xf32>
      %136 = arith.addf %129, %135 : vector<8x1xf32>
      %137 = arith.mulf %76, %76 : vector<8x8xf32>
      %cst_122 = arith.constant dense<0.000000e+00> : vector<8xf32>
      %138 = vector.multi_reduction <add>, %137, %cst_122 [1] : vector<8x8xf32> to vector<8xf32>
      %139 = vector.shape_cast %138 : vector<8xf32> to vector<8x1xf32>
      %140 = arith.addf %133, %139 : vector<8x1xf32>
      %cst_123 = arith.constant dense<0.000000e+00> : vector<8xf32>
      %141 = vector.multi_reduction <add>, %83, %cst_123 [1] : vector<8x8xf32> to vector<8xf32>
      %142 = vector.shape_cast %141 : vector<8xf32> to vector<8x1xf32>
      %143 = arith.addf %136, %142 : vector<8x1xf32>
      %144 = arith.mulf %83, %83 : vector<8x8xf32>
      %cst_124 = arith.constant dense<0.000000e+00> : vector<8xf32>
      %145 = vector.multi_reduction <add>, %144, %cst_124 [1] : vector<8x8xf32> to vector<8xf32>
      %146 = vector.shape_cast %145 : vector<8xf32> to vector<8x1xf32>
      %147 = arith.addf %140, %146 : vector<8x1xf32>
      %cst_125 = arith.constant dense<0.000000e+00> : vector<8xf32>
      %148 = vector.multi_reduction <add>, %90, %cst_125 [1] : vector<8x8xf32> to vector<8xf32>
      %149 = vector.shape_cast %148 : vector<8xf32> to vector<8x1xf32>
      %150 = arith.addf %143, %149 : vector<8x1xf32>
      %151 = arith.mulf %90, %90 : vector<8x8xf32>
      %cst_126 = arith.constant dense<0.000000e+00> : vector<8xf32>
      %152 = vector.multi_reduction <add>, %151, %cst_126 [1] : vector<8x8xf32> to vector<8xf32>
      %153 = vector.shape_cast %152 : vector<8xf32> to vector<8x1xf32>
      %154 = arith.addf %147, %153 : vector<8x1xf32>
      %cst_127 = arith.constant dense<0.000000e+00> : vector<8xf32>
      %155 = vector.multi_reduction <add>, %97, %cst_127 [1] : vector<8x8xf32> to vector<8xf32>
      %156 = vector.shape_cast %155 : vector<8xf32> to vector<8x1xf32>
      %157 = arith.addf %150, %156 : vector<8x1xf32>
      %158 = arith.mulf %97, %97 : vector<8x8xf32>
      %cst_128 = arith.constant dense<0.000000e+00> : vector<8xf32>
      %159 = vector.multi_reduction <add>, %158, %cst_128 [1] : vector<8x8xf32> to vector<8xf32>
      %160 = vector.shape_cast %159 : vector<8xf32> to vector<8x1xf32>
      %161 = arith.addf %154, %160 : vector<8x1xf32>
      %cst_129 = arith.constant dense<0.000000e+00> : vector<8xf32>
      %162 = vector.multi_reduction <add>, %104, %cst_129 [1] : vector<8x8xf32> to vector<8xf32>
      %163 = vector.shape_cast %162 : vector<8xf32> to vector<8x1xf32>
      %164 = arith.addf %157, %163 : vector<8x1xf32>
      %165 = arith.mulf %104, %104 : vector<8x8xf32>
      %cst_130 = arith.constant dense<0.000000e+00> : vector<8xf32>
      %166 = vector.multi_reduction <add>, %165, %cst_130 [1] : vector<8x8xf32> to vector<8xf32>
      %167 = vector.shape_cast %166 : vector<8xf32> to vector<8x1xf32>
      %168 = arith.addf %161, %167 : vector<8x1xf32>
      %c0_131 = arith.constant 0 : index
      %c0_132 = arith.constant 0 : index
      %169 = vector.load %arg6[%c0_131, %c0_132] : memref<8x1xf32, #tpu.memory_space<vmem>>, vector<8x1xf32>
      tpu.vector_store %arg6[%c0_131, %c0_132], %164 {strides = array<i32>} : memref<8x1xf32, #tpu.memory_space<vmem>>, vector<8x1xf32>,
      %c0_133 = arith.constant 0 : index
      %c0_134 = arith.constant 0 : index
      %170 = vector.load %arg7[%c0_133, %c0_134] : memref<8x1xf32, #tpu.memory_space<vmem>>, vector<8x1xf32>
      tpu.vector_store %arg7[%c0_133, %c0_134], %168 {strides = array<i32>} : memref<8x1xf32, #tpu.memory_space<vmem>>, vector<8x1xf32>,
    } else {
    }
    %c1_i32 = arith.constant 1 : i32
    %108 = arith.cmpi eq, %arg0, %c1_i32 : i32
    %109 = arith.extui %108 : i1 to i32
    %c0_i32_110 = arith.constant 0 : i32
    %110 = arith.cmpi ne, %109, %c0_i32_110 : i32
    scf.if %110 {
      %c0_111 = arith.constant 0 : index
      %c0_112 = arith.constant 0 : index
      %111 = vector.load %arg6[%c0_111, %c0_112] : memref<8x1xf32, #tpu.memory_space<vmem>>, vector<8x1xf32>
      %cst_113 = arith.constant 7.812500e-03 : f32
      %112 = vector.broadcast %cst_113 : f32 to vector<8x1xf32>
      %113 = arith.mulf %111, %112 : vector<8x1xf32>
      %c0_114 = arith.constant 0 : index
      %c0_115 = arith.constant 0 : index
      %114 = vector.load %arg7[%c0_114, %c0_115] : memref<8x1xf32, #tpu.memory_space<vmem>>, vector<8x1xf32>
      %cst_116 = arith.constant 7.812500e-03 : f32
      %115 = vector.broadcast %cst_116 : f32 to vector<8x1xf32>
      %116 = arith.mulf %114, %115 : vector<8x1xf32>
      %117 = arith.mulf %113, %113 : vector<8x1xf32>
      %118 = arith.subf %116, %117 : vector<8x1xf32>
      %c0_117 = arith.constant 0 : index
      %c0_118 = arith.constant 0 : index
      %119 = vector.load %arg4[%c0_117, %c0_118] : memref<8x2xf32, #tpu.memory_space<vmem>>, vector<8x1xf32>
      %cst_119 = arith.constant 9.99999974E-6 : f32
      %120 = vector.broadcast %cst_119 : f32 to vector<8x1xf32>
      %121 = arith.addf %118, %120 : vector<8x1xf32>
      %122 = math.rsqrt %121 : vector<8x1xf32>
      %123 = arith.mulf %119, %122 : vector<8x1xf32>
      %c0_120 = arith.constant 0 : index
      %c1_121 = arith.constant 1 : index
      %124 = vector.load %arg4[%c0_120, %c1_121] : memref<8x2xf32, #tpu.memory_space<vmem>>, vector<8x1xf32>
      %125 = arith.mulf %113, %123 : vector<8x1xf32>
      %126 = arith.subf %124, %125 : vector<8x1xf32>
      %127 = vector.broadcast %123 : vector<8x1xf32> to vector<8x8xf32>
      %128 = arith.mulf %55, %127 : vector<8x8xf32>
      %129 = vector.broadcast %126 : vector<8x1xf32> to vector<8x8xf32>
      %130 = arith.addf %128, %129 : vector<8x8xf32>
      %cst_122 = arith.constant 0.000000e+00 : f32
      %131 = vector.broadcast %cst_122 : f32 to vector<8x8xf32>
      %132 = arith.maximumf %130, %131 : vector<8x8xf32>
      %c0_123 = arith.constant 0 : index
      %c0_124 = arith.constant 0 : index
      %c0_125 = arith.constant 0 : index
      %c0_126 = arith.constant 0 : index
      %133 = vector.load %arg5[%c0_123, %c0_124, %c0_125, %c0_126] : memref<1x8x8x8xf32, #tpu.memory_space<vmem>>, vector<1x8x1x8xf32>
      %134 = vector.shape_cast %133 : vector<1x8x1x8xf32> to vector<8x8xf32>
      %135 = vector.shape_cast %132 : vector<8x8xf32> to vector<1x8x1x8xf32>
      tpu.vector_store %arg5[%c0_123, %c0_124, %c0_125, %c0_126], %135 {strides = array<i32>} : memref<1x8x8x8xf32, #tpu.memory_space<vmem>>, vector<1x8x1x8xf32>,
      %136 = vector.broadcast %123 : vector<8x1xf32> to vector<8x8xf32>
      %137 = arith.mulf %62, %136 : vector<8x8xf32>
      %138 = vector.broadcast %126 : vector<8x1xf32> to vector<8x8xf32>
      %139 = arith.addf %137, %138 : vector<8x8xf32>
      %cst_127 = arith.constant 0.000000e+00 : f32
      %140 = vector.broadcast %cst_127 : f32 to vector<8x8xf32>
      %141 = arith.maximumf %139, %140 : vector<8x8xf32>
      %c0_128 = arith.constant 0 : index
      %c0_129 = arith.constant 0 : index
      %c1_130 = arith.constant 1 : index
      %c0_131 = arith.constant 0 : index
      %142 = vector.load %arg5[%c0_128, %c0_129, %c1_130, %c0_131] : memref<1x8x8x8xf32, #tpu.memory_space<vmem>>, vector<1x8x1x8xf32>
      %143 = vector.shape_cast %142 : vector<1x8x1x8xf32> to vector<8x8xf32>
      %144 = vector.shape_cast %141 : vector<8x8xf32> to vector<1x8x1x8xf32>
      tpu.vector_store %arg5[%c0_128, %c0_129, %c1_130, %c0_131], %144 {strides = array<i32>} : memref<1x8x8x8xf32, #tpu.memory_space<vmem>>, vector<1x8x1x8xf32>,
      %145 = vector.broadcast %123 : vector<8x1xf32> to vector<8x8xf32>
      %146 = arith.mulf %69, %145 : vector<8x8xf32>
      %147 = vector.broadcast %126 : vector<8x1xf32> to vector<8x8xf32>
      %148 = arith.addf %146, %147 : vector<8x8xf32>
      %cst_132 = arith.constant 0.000000e+00 : f32
      %149 = vector.broadcast %cst_132 : f32 to vector<8x8xf32>
      %150 = arith.maximumf %148, %149 : vector<8x8xf32>
      %c0_133 = arith.constant 0 : index
      %c0_134 = arith.constant 0 : index
      %c2_135 = arith.constant 2 : index
      %c0_136 = arith.constant 0 : index
      %151 = vector.load %arg5[%c0_133, %c0_134, %c2_135, %c0_136] : memref<1x8x8x8xf32, #tpu.memory_space<vmem>>, vector<1x8x1x8xf32>
      %152 = vector.shape_cast %151 : vector<1x8x1x8xf32> to vector<8x8xf32>
      %153 = vector.shape_cast %150 : vector<8x8xf32> to vector<1x8x1x8xf32>
      tpu.vector_store %arg5[%c0_133, %c0_134, %c2_135, %c0_136], %153 {strides = array<i32>} : memref<1x8x8x8xf32, #tpu.memory_space<vmem>>, vector<1x8x1x8xf32>,
      %154 = vector.broadcast %123 : vector<8x1xf32> to vector<8x8xf32>
      %155 = arith.mulf %76, %154 : vector<8x8xf32>
      %156 = vector.broadcast %126 : vector<8x1xf32> to vector<8x8xf32>
      %157 = arith.addf %155, %156 : vector<8x8xf32>
      %cst_137 = arith.constant 0.000000e+00 : f32
      %158 = vector.broadcast %cst_137 : f32 to vector<8x8xf32>
      %159 = arith.maximumf %157, %158 : vector<8x8xf32>
      %c0_138 = arith.constant 0 : index
      %c0_139 = arith.constant 0 : index
      %c3_140 = arith.constant 3 : index
      %c0_141 = arith.constant 0 : index
      %160 = vector.load %arg5[%c0_138, %c0_139, %c3_140, %c0_141] : memref<1x8x8x8xf32, #tpu.memory_space<vmem>>, vector<1x8x1x8xf32>
      %161 = vector.shape_cast %160 : vector<1x8x1x8xf32> to vector<8x8xf32>
      %162 = vector.shape_cast %159 : vector<8x8xf32> to vector<1x8x1x8xf32>
      tpu.vector_store %arg5[%c0_138, %c0_139, %c3_140, %c0_141], %162 {strides = array<i32>} : memref<1x8x8x8xf32, #tpu.memory_space<vmem>>, vector<1x8x1x8xf32>,
      %163 = vector.broadcast %123 : vector<8x1xf32> to vector<8x8xf32>
      %164 = arith.mulf %83, %163 : vector<8x8xf32>
      %165 = vector.broadcast %126 : vector<8x1xf32> to vector<8x8xf32>
      %166 = arith.addf %164, %165 : vector<8x8xf32>
      %cst_142 = arith.constant 0.000000e+00 : f32
      %167 = vector.broadcast %cst_142 : f32 to vector<8x8xf32>
      %168 = arith.maximumf %166, %167 : vector<8x8xf32>
      %c0_143 = arith.constant 0 : index
      %c0_144 = arith.constant 0 : index
      %c4_145 = arith.constant 4 : index
      %c0_146 = arith.constant 0 : index
      %169 = vector.load %arg5[%c0_143, %c0_144, %c4_145, %c0_146] : memref<1x8x8x8xf32, #tpu.memory_space<vmem>>, vector<1x8x1x8xf32>
      %170 = vector.shape_cast %169 : vector<1x8x1x8xf32> to vector<8x8xf32>
      %171 = vector.shape_cast %168 : vector<8x8xf32> to vector<1x8x1x8xf32>
      tpu.vector_store %arg5[%c0_143, %c0_144, %c4_145, %c0_146], %171 {strides = array<i32>} : memref<1x8x8x8xf32, #tpu.memory_space<vmem>>, vector<1x8x1x8xf32>,
      %172 = vector.broadcast %123 : vector<8x1xf32> to vector<8x8xf32>
      %173 = arith.mulf %90, %172 : vector<8x8xf32>
      %174 = vector.broadcast %126 : vector<8x1xf32> to vector<8x8xf32>
      %175 = arith.addf %173, %174 : vector<8x8xf32>
      %cst_147 = arith.constant 0.000000e+00 : f32
      %176 = vector.broadcast %cst_147 : f32 to vector<8x8xf32>
      %177 = arith.maximumf %175, %176 : vector<8x8xf32>
      %c0_148 = arith.constant 0 : index
      %c0_149 = arith.constant 0 : index
      %c5_150 = arith.constant 5 : index
      %c0_151 = arith.constant 0 : index
      %178 = vector.load %arg5[%c0_148, %c0_149, %c5_150, %c0_151] : memref<1x8x8x8xf32, #tpu.memory_space<vmem>>, vector<1x8x1x8xf32>
      %179 = vector.shape_cast %178 : vector<1x8x1x8xf32> to vector<8x8xf32>
      %180 = vector.shape_cast %177 : vector<8x8xf32> to vector<1x8x1x8xf32>
      tpu.vector_store %arg5[%c0_148, %c0_149, %c5_150, %c0_151], %180 {strides = array<i32>} : memref<1x8x8x8xf32, #tpu.memory_space<vmem>>, vector<1x8x1x8xf32>,
      %181 = vector.broadcast %123 : vector<8x1xf32> to vector<8x8xf32>
      %182 = arith.mulf %97, %181 : vector<8x8xf32>
      %183 = vector.broadcast %126 : vector<8x1xf32> to vector<8x8xf32>
      %184 = arith.addf %182, %183 : vector<8x8xf32>
      %cst_152 = arith.constant 0.000000e+00 : f32
      %185 = vector.broadcast %cst_152 : f32 to vector<8x8xf32>
      %186 = arith.maximumf %184, %185 : vector<8x8xf32>
      %c0_153 = arith.constant 0 : index
      %c0_154 = arith.constant 0 : index
      %c6_155 = arith.constant 6 : index
      %c0_156 = arith.constant 0 : index
      %187 = vector.load %arg5[%c0_153, %c0_154, %c6_155, %c0_156] : memref<1x8x8x8xf32, #tpu.memory_space<vmem>>, vector<1x8x1x8xf32>
      %188 = vector.shape_cast %187 : vector<1x8x1x8xf32> to vector<8x8xf32>
      %189 = vector.shape_cast %186 : vector<8x8xf32> to vector<1x8x1x8xf32>
      tpu.vector_store %arg5[%c0_153, %c0_154, %c6_155, %c0_156], %189 {strides = array<i32>} : memref<1x8x8x8xf32, #tpu.memory_space<vmem>>, vector<1x8x1x8xf32>,
      %190 = vector.broadcast %123 : vector<8x1xf32> to vector<8x8xf32>
      %191 = arith.mulf %104, %190 : vector<8x8xf32>
      %192 = vector.broadcast %126 : vector<8x1xf32> to vector<8x8xf32>
      %193 = arith.addf %191, %192 : vector<8x8xf32>
      %cst_157 = arith.constant 0.000000e+00 : f32
      %194 = vector.broadcast %cst_157 : f32 to vector<8x8xf32>
      %195 = arith.maximumf %193, %194 : vector<8x8xf32>
      %c0_158 = arith.constant 0 : index
      %c0_159 = arith.constant 0 : index
      %c7_160 = arith.constant 7 : index
      %c0_161 = arith.constant 0 : index
      %196 = vector.load %arg5[%c0_158, %c0_159, %c7_160, %c0_161] : memref<1x8x8x8xf32, #tpu.memory_space<vmem>>, vector<1x8x1x8xf32>
      %197 = vector.shape_cast %196 : vector<1x8x1x8xf32> to vector<8x8xf32>
      %198 = vector.shape_cast %195 : vector<8x8xf32> to vector<1x8x1x8xf32>
      tpu.vector_store %arg5[%c0_158, %c0_159, %c7_160, %c0_161], %198 {strides = array<i32>} : memref<1x8x8x8xf32, #tpu.memory_space<vmem>>, vector<1x8x1x8xf32>,
    } else {
    }
    return
  }
  func.func @transform_0(%arg0: i32, %arg1: i32) -> (i32, i32, i32) {
    %c0_i32 = arith.constant 0 : i32
    %c0_i32_0 = arith.constant 0 : i32
    %c0_i32_1 = arith.constant 0 : i32
    %c0_i32_2 = arith.constant 0 : i32
    return %c0_i32, %c0_i32_0, %c0_i32_1 : i32, i32, i32
  }
  func.func @transform_1(%arg0: i32, %arg1: i32) -> (i32, i32, i32, i32) {
    %c0_i32 = arith.constant 0 : i32
    %c0_i32_0 = arith.constant 0 : i32
    %c0_i32_1 = arith.constant 0 : i32
    %c0_i32_2 = arith.constant 0 : i32
    return %arg1, %c0_i32, %c0_i32_0, %c0_i32_1 : i32, i32, i32, i32
  }
  func.func @transform_2(%arg0: i32, %arg1: i32) -> (i32, i32) {
    %c0_i32 = arith.constant 0 : i32
    %c0_i32_0 = arith.constant 0 : i32
    %c0_i32_1 = arith.constant 0 : i32
    return %c0_i32, %c0_i32_0 : i32, i32
  }
  func.func @transform_3(%arg0: i32, %arg1: i32) -> (i32, i32, i32, i32) {
    %0 = arith.muli %arg1, %arg0 : i32
    %c0_i32 = arith.constant 0 : i32
    %c0_i32_0 = arith.constant 0 : i32
    %c0_i32_1 = arith.constant 0 : i32
    %c0_i32_2 = arith.constant 0 : i32
    return %0, %c0_i32, %c0_i32_0, %c0_i32_1 : i32, i32, i32, i32
  }
}

</mosaic_0001>

<bundles_post_ra>
// kernel: conv_block_forward.1
= control target key start
LH: loop header
LB: loop body
LE: loop exit
PB: predicated region body
PF: predicated region fallthrough
CT: control target
= control target key end

     0   :  { %8 = vsyncpa [#allocation5], 0  ;;  %s3554_s0 = inlined_call_operand.vmem [shape: bf16[4,8,16], index: 0, kind: input, shape index: {}]   ;;  %s3555_s1 = inlined_call_operand.vmem [shape: bf16[2,9,16,9], index: 1, kind: input, shape index: {}]   ;;  %s3556_s2 = inlined_call_operand.vmem [shape: f32[8,2], index: 2, kind: input, shape index: {}]   ;;  %s3557_s3 = inlined_call_operand.hbm [shape: f32[2,8,8,8], index: 3, kind: output, shape index: {}]  }
   0x1   :  { %10 = vsyncpa [#allocation5 + $0x1], 0  ;;  %s2921_s12 = smov 0   ;;  %s2923_s13 = smov 0  }
   0x2   :  { %s2925_s14 = smov 0   ;;  %s2927_s15 = smov 0  }
   0x3   :  { %s2929_s16 = smov 0   ;;  %s2931_s17 = smov 0  }
   0x4   :  { %s2933_s18 = smov 0   ;;  %s2935_s19 = smov 0  }
   0x5 LB: > { %s2369_s20 = sadd.s32 4294967295, %s2888_s19   ;;  %s2370_s21 = sadd.s32 4294967294, %s2888_s19   ;;  %s2888_s19 = sphi %s2935_s19, %s16_s19   ;;  %s2884_s18 = sphi %s2933_s18, %s3566_s18   ;;  %s2880_s17 = sphi %s2931_s17, %s3565_s17   ;;  %s2876_s16 = sphi %s2929_s16, %s3564_s16   ;;  %s2872_s15 = sphi %s2927_s15, %s3563_s15   ;;  %s2868_s14 = sphi %s2925_s14, %s3562_s14   ;;  %s2864_s13 = sphi %s2923_s13, %s3561_s13   ;;  %s2860_s12 = sphi %s2921_s12, %s3560_s12  }
   0x6   : > { %s25_s22 = sadd.s32 1, %s2880_s17  ;;  %s28_s23 = sadd.s32 1, %s2884_s18 }
   0x7   : > { %p26_p0 = scmp.ge.s32.totalorder %s25_s22, 2  ;;  %s100_s24 = smul.u32 %s2880_s17, %s2884_s18 }
   0x8   : > { %p115_p1 = scmp.ne.s32.totalorder %s2868_s14, %s2864_s13  ;;  %p116_p2 = scmp.eq.s32.totalorder %s2369_s20, 3 }
   0x9   : > { %s3568_s22 = smov (%p26_p0, %s25_s22), 0  ;;  %s3570_s23 = smov (!%p26_p0, %s28_s23), %s2884_s18 }
   0xa   : > { %p121_p3 = scmp.ne.s32.totalorder %s2864_s13, %s2860_s12  ;;  %p30_p4 = scmp.ge.s32.totalorder %s3570_s23, 2 }
   0xb   : > { %p122_p5 = scmp.eq.s32.totalorder %s2370_s21, 3  ;;  %p2974_p6 = por %p116_p2, %p115_p1 }
   0xc   : > { %p2373_p7 = scmp.ge.s32.totalorder %s2888_s19, 1  ;;  %s3572_s23 = smov (%p30_p4, %s3570_s23), 0 }
   0xd   : > { %p2981_p8 = por %p122_p5, %p121_p3  ;;  %p154_p9 = scmp.lt.s32.totalorder %s2888_s19, 5 }
   0xe   : > { %s101_s27 = smul.u32 %s3572_s23, %s3568_s22  ;;  %s105_s29 = sadd.s32 1, %s2868_s14 }
   0xf   : > { %p155_p10 = pnand %p2373_p7, %p154_p9 }
  0x10   : > { %s102_s28 = ssub.s32 %s100_s24, %s101_s27  ;;  %s175_s4 = sand.u32 (!%p155_p10), 1, %s2864_s13  }
  0x11   : > { %p103_p11 = scmp.eq.s32.totalorder %s102_s28, 0  ;;  %158 = sbr.rel (%p155_p10) target bundleno = 983 (0x3d7), region = 32 }
  0x12   : > { %p178_p12 = scmp.lt.s32.totalorder (!%p155_p10), %s2872_s15, 1  ;;  %s2374_s5 = sshll.u32 (!%p155_p10), %s175_s4, 6 }
  0x13   : > { %s2990_s30 = scalar_select %p103_p11, %s2868_s14, %s105_s29  }
  0x14   : > { %p185_p13 = scmp.eq.s32.totalorder (!%p155_p10), %s2876_s16, 0  ;;  %p186_p0 = scmp.eq.s32.totalorder (!%p155_p10), %s2872_s15, 0 }
  0x15   : > { %s3004_s11 = scalar_lea.vmem (!%p155_p10), [#allocation4], %s2374_s5 }
  0x16   : > { %s179_s6 = scalar_select %p178_p12, %s2872_s15, 1 }
  0x17   : > { %p187_p1 = pnand %p186_p0, %p185_p13 }
  0x18   : > { %s2700_s7 = smul.u32 72, %s179_s6 }
  0x19   : > { %190 = sbr.rel (%p187_p1) target bundleno = 32 (0x20), region = 36 }
  0x1a   : > { %s3002_s10 = scalar_lea.vmem %s3555_s1, %s2700_s7 }
  0x1e   : > { %vm191_vm0 = vcmask 7168   ;;  %v2890_v0 = vmov 0.0  }
  0x1f   : > { %192 = vst.msk [vmem:[#allocation2] sm:$0xff] %vm191_vm0, %v2890_v0  ;;  %193 = vst.msk [vmem:[#allocation3] sm:$0xff] %vm191_vm0, %v2890_v0 }
  0x20 PF: > { %v2782_v1 = vld [vmem:[%s3002_s10] sm:$0xff]   ;;  %v2783_v2 = vld [vmem:[%s3002_s10 + $0x8] sm:$0xff]   ;;  %s2891_s20 = smov 127   ;;  %v2784_v3 = vld [vmem:[%s3002_s10 + $0x10] sm:$0xff]   ;;  %v2892_v4 = vmov 0.0   ;;  %vm2893_vm1 = vmmov 0  }
  0x21   : > { %232 = vrot.lane.b32.xlu0 %v2782_v1, %s2891_s20  ;;  %2514 = vmatprep.subr.bf16.mxu1 %v2892_v4  ;;  %v3013_v5 = vld [vmem:[%s3002_s10 + $0x18] sm:$0xff]   ;;  %v3020_v6 = vld [vmem:[%s3002_s10 + $0x20] sm:$0xff]   ;;  %vm235_vm2 = vcmask 130048   ;;  %v3023_v7 = vld [vmem:[%s3002_s10 + $0x28] sm:$0xff]   ;;  %p2436_p2 = scmp.ne.s32.totalorder %s2876_s16, 0 }
  0x22   : > { %2515 = vmatpush3.bf16.msra.mxu1 %v2782_v1  ;;  %2516 = vmatprep.mubr.msk.bf16.mxu1 %vm2893_vm1, %v2892_v4  ;;  %v3029_v8 = vld [vmem:[%s3554_s0] sm:$0xf]  ;;  %v3035_v9 = vld [vmem:[%s3002_s10 + $0x30] sm:$0xff]   ;;  %v3041_v10 = vld [vmem:[%s3002_s10 + $0x38] sm:$0xff]  }
  0x23   : > { %547 = vrot.lane.b32.xlu1 %v2784_v3, %s2891_s20  ;;  %2508 = vmatprep.subr.bf16.mxu0 %v2892_v4  ;;  %v3045_v11 = vld [vmem:[%s3002_s10 + $0x40] sm:$0xff]   ;;  %v3060_v15 = vld [vmem:[%s3554_s0 + $0xc] sm:$0xf]  ;;  %v3071_v16 = vld [vmem:[%s3554_s0 + $0x8] sm:$0xf] }
  0x24   : > { %2510 = vmatprep.mubr.msk.bf16.mxu0 %vm2893_vm1, %v2892_v4  ;;  %2526 = vmatprep.subr.bf16.mxu1 %v2892_v4  ;;  %v3052_v13 = vld [vmem:[%s3554_s0 + $0x4] sm:$0xf] }
  0x25   : > { %373 = vrot.lane.b32.xlu0 %v2783_v2, %s2891_s20  ;;  %2517 = vmatmul.mubr.msk.bf16.vlgmr.msra.gmra.mxu1 %vm235_vm2, %v3029_v8 }
  0x26   : > { %2528 = vmatprep.mubr.msk.bf16.mxu1 %vm2893_vm1, %v2892_v4 }
  0x27   : > { %718 = vrot.lane.b32.xlu1 %v3013_v5, %s2891_s20 }
  0x29   : > { %889 = vrot.lane.b32.xlu0 %v3020_v6, %s2891_s20 }
  0x2b   : > { %1060 = vrot.lane.b32.xlu1 %v3023_v7, %s2891_s20 }
  0x2d   : > { %1231 = vrot.lane.b32.xlu0 %v3035_v9, %s2891_s20 }
  0x2f   : > { %1402 = vrot.lane.b32.xlu1 %v3041_v10, %s2891_s20 }
  0x31   : > { %1573 = vrot.lane.b32.xlu0 %v3045_v11, %s2891_s20 }
  0x93   : > { %v233_v12 = vpop.permute.xlu0 %232 }
  0x94   : > { %2509 = vmatpush3.bf16.msra.mxu0 %v233_v12 }
  0x95   : > { %2520 = vmatprep.subr.bf16.mxu0 %v2892_v4  ;;  %v548_v17 = vpop.permute.xlu1 %547 }
  0x97   : > { %v374_v14 = vpop.permute.xlu0 %373  ;;  %2511 = vmatmul.mubr.msk.bf16.vlgmr.msra.gmra.mxu0 %vm235_vm2, %v3052_v13 }
  0x98   : > { %2521 = vmatpush3.bf16.msra.mxu0 %v2783_v2  ;;  %2527 = vmatpush3.bf16.msra.mxu1 %v374_v14 }
  0x99   : > { %2522 = vmatprep.mubr.msk.bf16.mxu0 %vm2893_vm1, %v2892_v4  ;;  %2532 = vmatprep.subr.bf16.mxu0 %v2892_v4  ;;  %v719_v18 = vpop.permute.xlu1 %718 }
  0x9a   : > { %2538 = vmatprep.subr.bf16.mxu1 %v2892_v4 }
  0x9b   : > { %2529 = vmatmul.mubr.msk.bf16.vlgmr.msra.gmra.mxu1 %vm235_vm2, %v3060_v15  ;;  %v890_v19 = vpop.permute.xlu0 %889 }
  0x9c   : > { %2539 = vmatpush3.bf16.msra.mxu1 %v2783_v2  ;;  %2540 = vmatprep.mubr.msk.bf16.mxu1 %vm2893_vm1, %v2892_v4 }
  0x9d   : > { %2550 = vmatprep.subr.bf16.mxu1 %v2892_v4  ;;  %v1061_v20 = vpop.permute.xlu1 %1060 }
  0x9f   : > { %2523 = vmatmul.mubr.msk.bf16.vlgmr.msra.gmra.mxu0 %vm235_vm2, %v3071_v16  ;;  %v1232_v21 = vpop.permute.xlu0 %1231 }
  0xa0   : > { %2533 = vmatpush3.bf16.msra.mxu0 %v374_v14  ;;  %2534 = vmatprep.mubr.msk.bf16.mxu0 %vm2893_vm1, %v2892_v4 }
  0xa1   : > { %2544 = vmatprep.subr.bf16.mxu0 %v2892_v4  ;;  %v1403_v26 = vpop.permute.xlu1 %1402 }
  0xa3   : > { %2541 = vmatmul.mubr.msk.bf16.vlgmr.msra.gmra.mxu1 %vm235_vm2, %v3029_v8  ;;  %v1574_v27 = vpop.permute.xlu0 %1573 }
  0xa4   : > { %2551 = vmatpush3.bf16.msra.mxu1 %v548_v17  ;;  %2552 = vmatprep.mubr.msk.bf16.mxu1 %vm2893_vm1, %v2892_v4 }
  0xa5   : > { %2562 = vmatprep.subr.bf16.mxu1 %v2892_v4 }
  0xa7   : > { %2535 = vmatmul.mubr.msk.bf16.vlgmr.msra.gmra.mxu0 %vm235_vm2, %v3052_v13 }
  0xa8   : > { %2545 = vmatpush3.bf16.msra.mxu0 %v2784_v3  ;;  %2546 = vmatprep.mubr.msk.bf16.mxu0 %vm2893_vm1, %v2892_v4 }
  0xa9   : > { %2556 = vmatprep.subr.bf16.mxu0 %v2892_v4 }
  0xab   : > { %2553 = vmatmul.mubr.msk.bf16.vlgmr.msra.gmra.mxu1 %vm235_vm2, %v3060_v15 }
  0xac   : > { %2563 = vmatpush3.bf16.msra.mxu1 %v2784_v3  ;;  %2564 = vmatprep.mubr.msk.bf16.mxu1 %vm2893_vm1, %v2892_v4 }
  0xad   : > { %2574 = vmatprep.subr.bf16.mxu1 %v2892_v4 }
  0xaf   : > { %2547 = vmatmul.mubr.msk.bf16.vlgmr.msra.gmra.mxu0 %vm235_vm2, %v3071_v16 }
  0xb0   : > { %2557 = vmatpush3.bf16.msra.mxu0 %v548_v17  ;;  %2558 = vmatprep.mubr.msk.bf16.mxu0 %vm2893_vm1, %v2892_v4 }
  0xb1   : > { %2568 = vmatprep.subr.bf16.mxu0 %v2892_v4 }
  0xb3   : > { %2565 = vmatmul.mubr.msk.bf16.vlgmr.msra.gmra.mxu1 %vm235_vm2, %v3029_v8 }
  0xb4   : > { %2575 = vmatpush3.bf16.msra.mxu1 %v719_v18  ;;  %2576 = vmatprep.mubr.msk.bf16.mxu1 %vm2893_vm1, %v2892_v4 }
  0xb5   : > { %2586 = vmatprep.subr.bf16.mxu1 %v2892_v4 }
  0xb7   : > { %2559 = vmatmul.mubr.msk.bf16.vlgmr.msra.gmra.mxu0 %vm235_vm2, %v3052_v13 }
  0xb8   : > { %2569 = vmatpush3.bf16.msra.mxu0 %v3013_v5  ;;  %2570 = vmatprep.mubr.msk.bf16.mxu0 %vm2893_vm1, %v2892_v4 }
  0xb9   : > { %2580 = vmatprep.subr.bf16.mxu0 %v2892_v4 }
  0xbb   : > { %2577 = vmatmul.mubr.msk.bf16.vlgmr.msra.gmra.mxu1 %vm235_vm2, %v3060_v15 }
  0xbc   : > { %2587 = vmatpush3.bf16.msra.mxu1 %v3013_v5  ;;  %2588 = vmatprep.mubr.msk.bf16.mxu1 %vm2893_vm1, %v2892_v4 }
  0xbd   : > { %2598 = vmatprep.subr.bf16.mxu1 %v2892_v4 }
  0xbf   : > { %2571 = vmatmul.mubr.msk.bf16.vlgmr.msra.gmra.mxu0 %vm235_vm2, %v3071_v16 }
  0xc0   : > { %2581 = vmatpush3.bf16.msra.mxu0 %v719_v18  ;;  %2582 = vmatprep.mubr.msk.bf16.mxu0 %vm2893_vm1, %v2892_v4 }
  0xc1   : > { %2592 = vmatprep.subr.bf16.mxu0 %v2892_v4 }
  0xc3   : > { %2589 = vmatmul.mubr.msk.bf16.vlgmr.msra.gmra.mxu1 %vm235_vm2, %v3029_v8 }
  0xc4   : > { %2599 = vmatpush3.bf16.msra.mxu1 %v890_v19  ;;  %2600 = vmatprep.mubr.msk.bf16.mxu1 %vm2893_vm1, %v2892_v4 }
  0xc5   : > { %2610 = vmatprep.subr.bf16.mxu1 %v2892_v4 }
  0xc7   : > { %2583 = vmatmul.mubr.msk.bf16.vlgmr.msra.gmra.mxu0 %vm235_vm2, %v3052_v13 }
  0xc8   : > { %2593 = vmatpush3.bf16.msra.mxu0 %v3020_v6  ;;  %2594 = vmatprep.mubr.msk.bf16.mxu0 %vm2893_vm1, %v2892_v4 }
  0xc9   : > { %2604 = vmatprep.subr.bf16.mxu0 %v2892_v4 }
  0xcb   : > { %2601 = vmatmul.mubr.msk.bf16.vlgmr.msra.gmra.mxu1 %vm235_vm2, %v3060_v15 }
  0xcc   : > { %2611 = vmatpush3.bf16.msra.mxu1 %v3020_v6  ;;  %2612 = vmatprep.mubr.msk.bf16.mxu1 %vm2893_vm1, %v2892_v4 }
  0xcd   : > { %2622 = vmatprep.subr.bf16.mxu1 %v2892_v4 }
  0xcf   : > { %2595 = vmatmul.mubr.msk.bf16.vlgmr.msra.gmra.mxu0 %vm235_vm2, %v3071_v16 }
  0xd0   : > { %2605 = vmatpush3.bf16.msra.mxu0 %v890_v19  ;;  %2606 = vmatprep.mubr.msk.bf16.mxu0 %vm2893_vm1, %v2892_v4 }
  0xd1   : > { %2616 = vmatprep.subr.bf16.mxu0 %v2892_v4 }
  0xd3   : > { %2613 = vmatmul.mubr.msk.bf16.vlgmr.msra.gmra.mxu1 %vm235_vm2, %v3029_v8 }
  0xd4   : > { %2623 = vmatpush3.bf16.msra.mxu1 %v1061_v20  ;;  %2624 = vmatprep.mubr.msk.bf16.mxu1 %vm2893_vm1, %v2892_v4 }
  0xd5   : > { %2634 = vmatprep.subr.bf16.mxu1 %v2892_v4 }
  0xd7   : > { %2607 = vmatmul.mubr.msk.bf16.vlgmr.msra.gmra.mxu0 %vm235_vm2, %v3052_v13 }
  0xd8   : > { %2617 = vmatpush3.bf16.msra.mxu0 %v3023_v7  ;;  %2618 = vmatprep.mubr.msk.bf16.mxu0 %vm2893_vm1, %v2892_v4 }
  0xd9   : > { %2628 = vmatprep.subr.bf16.mxu0 %v2892_v4 }
  0xdb   : > { %2625 = vmatmul.mubr.msk.bf16.vlgmr.msra.gmra.mxu1 %vm235_vm2, %v3060_v15 }
  0xdc   : > { %2635 = vmatpush3.bf16.msra.mxu1 %v3023_v7  ;;  %2636 = vmatprep.mubr.msk.bf16.mxu1 %vm2893_vm1, %v2892_v4 }
  0xdd   : > { %2646 = vmatprep.subr.bf16.mxu1 %v2892_v4 }
  0xdf   : > { %2619 = vmatmul.mubr.msk.bf16.vlgmr.msra.gmra.mxu0 %vm235_vm2, %v3071_v16 }
  0xe0   : > { %2629 = vmatpush3.bf16.msra.mxu0 %v1061_v20  ;;  %2630 = vmatprep.mubr.msk.bf16.mxu0 %vm2893_vm1, %v2892_v4 }
  0xe1   : > { %2640 = vmatprep.subr.bf16.mxu0 %v2892_v4 }
  0xe3   : > { %2637 = vmatmul.mubr.msk.bf16.vlgmr.msra.gmra.mxu1 %vm235_vm2, %v3029_v8 }
  0xe4   : > { %2647 = vmatpush3.bf16.msra.mxu1 %v1232_v21  ;;  %2648 = vmatprep.mubr.msk.bf16.mxu1 %vm2893_vm1, %v2892_v4 }
  0xe5   : > { %2658 = vmatprep.subr.bf16.mxu1 %v2892_v4  ;;  %v317_v22 = vpop.f32.mrf.mxu1 }
  0xe7   : > { %2631 = vmatmul.mubr.msk.bf16.vlgmr.msra.gmra.mxu0 %vm235_vm2, %v3052_v13  ;;  %v2518_v23 = vpop.f32.mrf.mxu1 }
  0xe8   : > { %2641 = vmatpush3.bf16.msra.mxu0 %v3035_v9  ;;  %2642 = vmatprep.mubr.msk.bf16.mxu0 %vm2893_vm1, %v2892_v4 }
  0xe9   : > { %2652 = vmatprep.subr.bf16.mxu0 %v2892_v4  ;;  %v320_v24 = vpop.f32.mrf.mxu1 }
  0xeb   : > { %2649 = vmatmul.mubr.msk.bf16.vlgmr.msra.gmra.mxu1 %vm235_vm2, %v3060_v15  ;;  %v2519_v25 = vpop.f32.mrf.mxu1 }
  0xec   : > { %2659 = vmatpush3.bf16.msra.mxu1 %v3035_v9  ;;  %2660 = vmatprep.mubr.msk.bf16.mxu1 %vm2893_vm1, %v2892_v4 }
  0xed   : > { %2670 = vmatprep.subr.bf16.mxu1 %v2892_v4 }
  0xef   : > { %2643 = vmatmul.mubr.msk.bf16.vlgmr.msra.gmra.mxu0 %vm235_vm2, %v3071_v16 }
  0xf0   : > { %2653 = vmatpush3.bf16.msra.mxu0 %v1232_v21  ;;  %2654 = vmatprep.mubr.msk.bf16.mxu0 %vm2893_vm1, %v2892_v4 }
  0xf1   : > { %2664 = vmatprep.subr.bf16.mxu0 %v2892_v4 }
  0xf3   : > { %2661 = vmatmul.mubr.msk.bf16.vlgmr.msra.gmra.mxu1 %vm235_vm2, %v3029_v8 }
  0xf4   : > { %2671 = vmatpush3.bf16.msra.mxu1 %v1403_v26  ;;  %2672 = vmatprep.mubr.msk.bf16.mxu1 %vm2893_vm1, %v2892_v4 }
  0xf5   : > { %2682 = vmatprep.subr.bf16.mxu1 %v2892_v4 }
  0xf7   : > { %2655 = vmatmul.mubr.msk.bf16.vlgmr.msra.gmra.mxu0 %vm235_vm2, %v3052_v13 }
  0xf8   : > { %2665 = vmatpush3.bf16.msra.mxu0 %v3041_v10  ;;  %2666 = vmatprep.mubr.msk.bf16.mxu0 %vm2893_vm1, %v2892_v4 }
  0xf9   : > { %2676 = vmatprep.subr.bf16.mxu0 %v2892_v4 }
  0xfb   : > { %2673 = vmatmul.mubr.msk.bf16.vlgmr.msra.gmra.mxu1 %vm235_vm2, %v3060_v15 }
  0xfc   : > { %2683 = vmatpush3.bf16.msra.mxu1 %v3041_v10  ;;  %2684 = vmatprep.mubr.msk.bf16.mxu1 %vm2893_vm1, %v2892_v4 }
  0xfd   : > { %2694 = vmatprep.subr.bf16.mxu1 %v2892_v4 }
  0xff   : > { %2667 = vmatmul.mubr.msk.bf16.vlgmr.msra.gmra.mxu0 %vm235_vm2, %v3071_v16 }
 0x100   : > { %2677 = vmatpush3.bf16.msra.mxu0 %v1403_v26  ;;  %2678 = vmatprep.mubr.msk.bf16.mxu0 %vm2893_vm1, %v2892_v4 }
 0x101   : > { %2688 = vmatprep.subr.bf16.mxu0 %v2892_v4 }
 0x103   : > { %2685 = vmatmul.mubr.msk.bf16.vlgmr.msra.gmra.mxu1 %vm235_vm2, %v3029_v8 }
 0x104   : > { %2695 = vmatpush3.bf16.msra.mxu1 %v1574_v27  ;;  %2696 = vmatprep.mubr.msk.bf16.mxu1 %vm2893_vm1, %v2892_v4 }
 0x107   : > { %2679 = vmatmul.mubr.msk.bf16.vlgmr.msra.gmra.mxu0 %vm235_vm2, %v3052_v13 }
 0x108   : > { %2689 = vmatpush3.bf16.msra.mxu0 %v3045_v11  ;;  %2690 = vmatprep.mubr.msk.bf16.mxu0 %vm2893_vm1, %v2892_v4 }
 0x10b   : > { %2697 = vmatmul.mubr.msk.bf16.vlgmr.msra.gmra.mxu1 %vm235_vm2, %v3060_v15 }
 0x10f   : > { %2691 = vmatmul.mubr.msk.bf16.vlgmr.msra.gmra.mxu0 %vm235_vm2, %v3071_v16 }
 0x157   : > { %v273_v28 = vpop.f32.mrf.mxu0 }
 0x158   : > { %v318_v34 = vadd.f32 %v317_v22, %v273_v28 }
 0x159   : > { %v2512_v29 = vpop.f32.mrf.mxu0 }
 0x15b   : > { %v276_v30 = vpop.f32.mrf.mxu0  ;;  %v413_v31 = vpop.f32.mrf.mxu1 }
 0x15d   : > { %v2513_v32 = vpop.f32.mrf.mxu0  ;;  %v2530_v33 = vpop.f32.mrf.mxu1 }
 0x15f   : > { %v366_v35 = vpop.f32.mrf.mxu0  ;;  %v416_v36 = vpop.f32.mrf.mxu1 }
 0x160   : > { %v372_v37 = vadd.f32 %v366_v35, %v318_v34 }
 0x161   : > { %v2524_v38 = vpop.f32.mrf.mxu0  ;;  %v2531_v39 = vpop.f32.mrf.mxu1 }
 0x162   : > { %v3224_v40 = vadd.f32 %v413_v31, %v372_v37 }
 0x163   : > { %v369_v41 = vpop.f32.mrf.mxu0  ;;  %v494_v42 = vpop.f32.mrf.mxu1 }
 0x165   : > { %v2525_v43 = vpop.f32.mrf.mxu0  ;;  %v2542_v44 = vpop.f32.mrf.mxu1 }
 0x167   : > { %v454_v45 = vpop.f32.mrf.mxu0  ;;  %v497_v46 = vpop.f32.mrf.mxu1 }
 0x168   : > { %v495_v47 = vadd.f32 %v494_v42, %v454_v45 }
 0x169   : > { %v2536_v48 = vpop.f32.mrf.mxu0  ;;  %v2543_v49 = vpop.f32.mrf.mxu1 }
 0x16b   : > { %v457_v50 = vpop.f32.mrf.mxu0  ;;  %v584_v51 = vpop.f32.mrf.mxu1 }
 0x16d   : > { %v2537_v52 = vpop.f32.mrf.mxu0  ;;  %v2554_v53 = vpop.f32.mrf.mxu1 }
 0x16f   : > { %v540_v54 = vpop.f32.mrf.mxu0  ;;  %v587_v55 = vpop.f32.mrf.mxu1 }
 0x170   : > { %v546_v56 = vadd.f32 %v540_v54, %v495_v47 }
 0x171   : > { %v2548_v57 = vpop.f32.mrf.mxu0  ;;  %v2555_v58 = vpop.f32.mrf.mxu1 }
 0x172   : > { %v3226_v59 = vadd.f32 %v584_v51, %v546_v56 }
 0x173   : > { %v543_v60 = vpop.f32.mrf.mxu0  ;;  %v665_v61 = vpop.f32.mrf.mxu1 }
 0x175   : > { %v2549_v62 = vpop.f32.mrf.mxu0  ;;  %v2566_v63 = vpop.f32.mrf.mxu1 }
 0x177   : > { %v625_v0 = vpop.f32.mrf.mxu0  ;;  %v668_v1 = vpop.f32.mrf.mxu1 }
 0x178   : > { %v666_v2 = vadd.f32 %v665_v61, %v625_v0 }
 0x179   : > { %v2560_v3 = vpop.f32.mrf.mxu0  ;;  %v2567_v4 = vpop.f32.mrf.mxu1 }
 0x17b   : > { %v628_v5 = vpop.f32.mrf.mxu0  ;;  %v755_v6 = vpop.f32.mrf.mxu1 }
 0x17d   : > { %v2561_v7 = vpop.f32.mrf.mxu0  ;;  %v2578_v8 = vpop.f32.mrf.mxu1 }
 0x17f   : > { %v711_v9 = vpop.f32.mrf.mxu0  ;;  %v758_v10 = vpop.f32.mrf.mxu1 }
 0x180   : > { %v717_v11 = vadd.f32 %v711_v9, %v666_v2 }
 0x181   : > { %v2572_v12 = vpop.f32.mrf.mxu0  ;;  %v2579_v13 = vpop.f32.mrf.mxu1 }
 0x182   : > { %v3228_v14 = vadd.f32 %v755_v6, %v717_v11 }
 0x183   : > { %v714_v15 = vpop.f32.mrf.mxu0  ;;  %v836_v16 = vpop.f32.mrf.mxu1 }
 0x185   : > { %v2573_v17 = vpop.f32.mrf.mxu0  ;;  %v2590_v18 = vpop.f32.mrf.mxu1 }
 0x187   : > { %v796_v19 = vpop.f32.mrf.mxu0  ;;  %v839_v20 = vpop.f32.mrf.mxu1 }
 0x188   : > { %v837_v21 = vadd.f32 %v836_v16, %v796_v19 }
 0x189   : > { %v2584_v22 = vpop.f32.mrf.mxu0  ;;  %v2591_v23 = vpop.f32.mrf.mxu1 }
 0x18b   : > { %v799_v24 = vpop.f32.mrf.mxu0  ;;  %v926_v25 = vpop.f32.mrf.mxu1 }
 0x18d   : > { %v2585_v26 = vpop.f32.mrf.mxu0  ;;  %v2602_v27 = vpop.f32.mrf.mxu1 }
 0x18f   : > { %v882_v28 = vpop.f32.mrf.mxu0  ;;  %v929_v29 = vpop.f32.mrf.mxu1 }
 0x190   : > { %v888_v30 = vadd.f32 %v882_v28, %v837_v21 }
 0x191   : > { %v2596_v31 = vpop.f32.mrf.mxu0  ;;  %v2603_v32 = vpop.f32.mrf.mxu1 }
 0x192   : > { %v3230_v33 = vadd.f32 %v926_v25, %v888_v30 }
 0x193   : > { %v885_v34 = vpop.f32.mrf.mxu0  ;;  %v1007_v35 = vpop.f32.mrf.mxu1 }
 0x195   : > { %v2597_v36 = vpop.f32.mrf.mxu0  ;;  %v2614_v37 = vpop.f32.mrf.mxu1 }
 0x197   : > { %v967_v38 = vpop.f32.mrf.mxu0  ;;  %v1010_v39 = vpop.f32.mrf.mxu1 }
 0x198   : > { %v1008_v47 = vadd.f32 %v1007_v35, %v967_v38 }
 0x199   : > { %v2608_v41 = vpop.f32.mrf.mxu0  ;;  %v2615_v42 = vpop.f32.mrf.mxu1 }
 0x19b   : > { %v970_v43 = vpop.f32.mrf.mxu0  ;;  %v1097_v44 = vpop.f32.mrf.mxu1 }
 0x19d   : > { %v2609_v45 = vpop.f32.mrf.mxu0  ;;  %v2626_v46 = vpop.f32.mrf.mxu1 }
 0x19f   : > { %v1053_v48 = vpop.f32.mrf.mxu0  ;;  %v1100_v49 = vpop.f32.mrf.mxu1 }
 0x1a0   : > { %v1059_v50 = vadd.f32 %v1053_v48, %v1008_v47 }
 0x1a1   : > { %v2620_v51 = vpop.f32.mrf.mxu0  ;;  %v2627_v52 = vpop.f32.mrf.mxu1 }
 0x1a2   : > { %v3232_v53 = vadd.f32 %v1097_v44, %v1059_v50 }
 0x1a3   : > { %v1056_v54 = vpop.f32.mrf.mxu0  ;;  %v1178_v55 = vpop.f32.mrf.mxu1 }
 0x1a5   : > { %v2621_v56 = vpop.f32.mrf.mxu0  ;;  %v2638_v57 = vpop.f32.mrf.mxu1 }
 0x1a7   : > { %v1138_v58 = vpop.f32.mrf.mxu0  ;;  %v1181_v60 = vpop.f32.mrf.mxu1 }
 0x1a8   : > { %v1179_v3 = vadd.f32 %v1178_v55, %v1138_v58 }
 0x1a9   : > { %v2632_v61 = vpop.f32.mrf.mxu0  ;;  %v2639_v62 = vpop.f32.mrf.mxu1 }
 0x1ab   : > { %v1141_v63 = vpop.f32.mrf.mxu0  ;;  %v1268_v0 = vpop.f32.mrf.mxu1 }
 0x1ad   : > { %v2633_v1 = vpop.f32.mrf.mxu0  ;;  %v2650_v2 = vpop.f32.mrf.mxu1 }
 0x1af   : > { %v1224_v4 = vpop.f32.mrf.mxu0  ;;  %v1271_v5 = vpop.f32.mrf.mxu1 }
 0x1b0   : > { %v1230_v6 = vadd.f32 %v1224_v4, %v1179_v3 }
 0x1b1   : > { %v2644_v7 = vpop.f32.mrf.mxu0  ;;  %v2651_v8 = vpop.f32.mrf.mxu1 }
 0x1b2   : > { %v3234_v9 = vadd.f32 %v1268_v0, %v1230_v6 }
 0x1b3   : > { %v1227_v10 = vpop.f32.mrf.mxu0  ;;  %v1349_v11 = vpop.f32.mrf.mxu1 }
 0x1b5   : > { %v2645_v12 = vpop.f32.mrf.mxu0  ;;  %v2662_v13 = vpop.f32.mrf.mxu1 }
 0x1b7   : > { %v1309_v15 = vpop.f32.mrf.mxu0  ;;  %v1352_v16 = vpop.f32.mrf.mxu1 }
 0x1b8   : > { %v1350_v23 = vadd.f32 %v1349_v11, %v1309_v15 }
 0x1b9   : > { %v2656_v17 = vpop.f32.mrf.mxu0  ;;  %v2663_v18 = vpop.f32.mrf.mxu1 }
 0x1bb   : > { %v1312_v19 = vpop.f32.mrf.mxu0  ;;  %v1439_v20 = vpop.f32.mrf.mxu1 }
 0x1bd   : > { %v2657_v21 = vpop.f32.mrf.mxu0  ;;  %v2674_v22 = vpop.f32.mrf.mxu1 }
 0x1bf   : > { %v1395_v24 = vpop.f32.mrf.mxu0  ;;  %v1442_v25 = vpop.f32.mrf.mxu1 }
 0x1c0   : > { %v1401_v26 = vadd.f32 %v1395_v24, %v1350_v23 }
 0x1c1   : > { %v2668_v27 = vpop.f32.mrf.mxu0  ;;  %v2675_v28 = vpop.f32.mrf.mxu1 }
 0x1c2   : > { %v3236_v29 = vadd.f32 %v1439_v20, %v1401_v26 }
 0x1c3   : > { %v1398_v30 = vpop.f32.mrf.mxu0  ;;  %v1520_v31 = vpop.f32.mrf.mxu1 }
 0x1c5   : > { %v2669_v32 = vpop.f32.mrf.mxu0  ;;  %v2686_v34 = vpop.f32.mrf.mxu1 }
 0x1c7   : > { %v1480_v35 = vpop.f32.mrf.mxu0  ;;  %v1523_v36 = vpop.f32.mrf.mxu1 }
 0x1c8   : > { %v1521_v44 = vadd.f32 %v1520_v31, %v1480_v35 }
 0x1c9   : > { %v2680_v37 = vpop.f32.mrf.mxu0  ;;  %v2687_v38 = vpop.f32.mrf.mxu1 }
 0x1cb   : > { %v1483_v39 = vpop.f32.mrf.mxu0  ;;  %v1610_v41 = vpop.f32.mrf.mxu1 }
 0x1cd   : > { %v2681_v42 = vpop.f32.mrf.mxu0  ;;  %v2698_v43 = vpop.f32.mrf.mxu1 }
 0x1cf   : > { %v1566_v45 = vpop.f32.mrf.mxu0  ;;  %v1613_v46 = vpop.f32.mrf.mxu1 }
 0x1d0   : > { %v1572_v47 = vadd.f32 %v1566_v45, %v1521_v44 }
 0x1d1   : > { %v2692_v48 = vpop.f32.mrf.mxu0  ;;  %v2699_v49 = vpop.f32.mrf.mxu1  ;;  %1619 = sbr.rel (%p2436_p2) target bundleno = 641 (0x281), region = 40 }
 0x1d2   : > { %v3238_v50 = vadd.f32 %v1610_v41, %v1572_v47 }
 0x1d3   : > { %v1569_v51 = vpop.f32.mrf.mxu0 }
 0x1d5   : > { %v2693_v52 = vpop.f32.mrf.mxu0 }
 0x1d6   : > { %vm1622_vm3 = vcmask 64512   ;;  %v1636_v54 = vmul.f32 %v3226_v59, %v3226_v59  ;;  %v1627_v55 = vmul.f32 %v3224_v40, %v3224_v40  ;;  %v1645_v61 = vmul.f32 %v3228_v14, %v3228_v14  ;;  %v1621_v21 = vld [vmem:[#allocation3] sm:$0xff]  ;;  %v1620_v24 = vld [vmem:[#allocation2] sm:$0xff] }
 0x1d7   : > { %v1632_v56 = vsel %vm1622_vm3, %v3226_v59, 0.0  ;;  %v1623_v57 = vsel %vm1622_vm3, %v3224_v40, 0.0  ;;  %v1641_v63 = vsel %vm1622_vm3, %v3228_v14, 0.0  ;;  %v1654_v0 = vmul.f32 %v3230_v33, %v3230_v33 }
 0x1d8   : > { %1633 = vadd.xlane.f32.xlu1 %v1632_v56  ;;  %1624 = vadd.xlane.f32.xlu0 %v1623_v57  ;;  %v1637_v58 = vsel %vm1622_vm3, %v1636_v54, 0.0  ;;  %v1628_v60 = vsel %vm1622_vm3, %v1627_v55, 0.0  ;;  %v1646_v62 = vsel %vm1622_vm3, %v1645_v61, 0.0  ;;  %v1650_v2 = vsel %vm1622_vm3, %v3230_v33, 0.0 }
 0x1d9   : > { %v1655_v1 = vsel %vm1622_vm3, %v1654_v0, 0.0  ;;  %v1663_v3 = vmul.f32 %v3232_v53, %v3232_v53  ;;  %v1659_v5 = vsel %vm1622_vm3, %v3232_v53, 0.0  ;;  %v1672_v6 = vmul.f32 %v3234_v9, %v3234_v9 }
 0x1da   : > { %v1668_v8 = vsel %vm1622_vm3, %v3234_v9, 0.0  ;;  %v1681_v10 = vmul.f32 %v3236_v29, %v3236_v29  ;;  %v1677_v12 = vsel %vm1622_vm3, %v3236_v29, 0.0  ;;  %v1690_v13 = vmul.f32 %v3238_v50, %v3238_v50 }
 0x1db   : > { %v1664_v4 = vsel %vm1622_vm3, %v1663_v3, 0.0  ;;  %v1673_v7 = vsel %vm1622_vm3, %v1672_v6, 0.0  ;;  %v1686_v16 = vsel %vm1622_vm3, %v3238_v50, 0.0  ;;  %vm1695_vm4 = vcmask 7168  }
 0x1dc   : > { %1638 = vadd.xlane.f32.xlu1 %v1637_v58  ;;  %1629 = vadd.xlane.f32.xlu0 %v1628_v60  ;;  %v1682_v11 = vsel %vm1622_vm3, %v1681_v10, 0.0  ;;  %v1691_v15 = vsel %vm1622_vm3, %v1690_v13, 0.0 }
 0x1e0   : > { %1647 = vadd.xlane.f32.xlu1 %v1646_v62  ;;  %1642 = vadd.xlane.f32.xlu0 %v1641_v63 }
 0x1e4   : > { %1656 = vadd.xlane.f32.xlu1 %v1655_v1  ;;  %1651 = vadd.xlane.f32.xlu0 %v1650_v2 }
 0x1e8   : > { %1665 = vadd.xlane.f32.xlu1 %v1664_v4  ;;  %1660 = vadd.xlane.f32.xlu0 %v1659_v5 }
 0x1ec   : > { %1674 = vadd.xlane.f32.xlu1 %v1673_v7  ;;  %1669 = vadd.xlane.f32.xlu0 %v1668_v8 }
 0x1f0   : > { %1683 = vadd.xlane.f32.xlu1 %v1682_v11  ;;  %1678 = vadd.xlane.f32.xlu0 %v1677_v12 }
 0x1f4   : > { %1692 = vadd.xlane.f32.xlu1 %v1691_v15  ;;  %1687 = vadd.xlane.f32.xlu0 %v1686_v16 }
 0x261   : > { %v1634_v17 = vpop.xlane.xlu1 %1633  ;;  %v1625_v18 = vpop.xlane.xlu0 %1624 }
 0x262   : > { %v1626_v28 = vadd.f32 %v1625_v18, %v1620_v24 }
 0x264   : > { %v1635_v34 = vadd.f32 %v1634_v17, %v1626_v28 }
 0x265   : > { %v1639_v19 = vpop.xlane.xlu1 %1638  ;;  %v1630_v20 = vpop.xlane.xlu0 %1629 }
 0x266   : > { %v1631_v25 = vadd.f32 %v1630_v20, %v1621_v21 }
 0x268   : > { %v1640_v30 = vadd.f32 %v1639_v19, %v1631_v25 }
 0x269   : > { %v1648_v22 = vpop.xlane.xlu1 %1647  ;;  %v1643_v23 = vpop.xlane.xlu0 %1642 }
 0x26a   : > { %v1649_v35 = vadd.f32 %v1648_v22, %v1640_v30  ;;  %v1644_v36 = vadd.f32 %v1643_v23, %v1635_v34 }
 0x26d   : > { %v1657_v26 = vpop.xlane.xlu1 %1656  ;;  %v1652_v27 = vpop.xlane.xlu0 %1651 }
 0x26e   : > { %v1658_v39 = vadd.f32 %v1657_v26, %v1649_v35  ;;  %v1653_v41 = vadd.f32 %v1652_v27, %v1644_v36 }
 0x271   : > { %v1666_v31 = vpop.xlane.xlu1 %1665  ;;  %v1661_v32 = vpop.xlane.xlu0 %1660 }
 0x272   : > { %v1667_v42 = vadd.f32 %v1666_v31, %v1658_v39  ;;  %v1662_v43 = vadd.f32 %v1661_v32, %v1653_v41 }
 0x275   : > { %v1675_v37 = vpop.xlane.xlu1 %1674  ;;  %v1670_v38 = vpop.xlane.xlu0 %1669 }
 0x276   : > { %v1676_v46 = vadd.f32 %v1675_v37, %v1667_v42  ;;  %v1671_v47 = vadd.f32 %v1670_v38, %v1662_v43 }
 0x279   : > { %v1684_v44 = vpop.xlane.xlu1 %1683  ;;  %v1679_v45 = vpop.xlane.xlu0 %1678 }
 0x27a   : > { %v1685_v48 = vadd.f32 %v1684_v44, %v1676_v46  ;;  %v1680_v49 = vadd.f32 %v1679_v45, %v1671_v47 }
 0x27d   : > { %v1693_v51 = vpop.xlane.xlu1 %1692  ;;  %v1688_v52 = vpop.xlane.xlu0 %1687 }
 0x27e   : > { %v1694_v54 = vadd.f32 %v1693_v51, %v1685_v48  ;;  %v1689_v55 = vadd.f32 %v1688_v52, %v1680_v49 }
 0x280   : > { %1697 = vst.msk [vmem:[#allocation3] sm:$0xff] %vm1695_vm4, %v1694_v54  ;;  %1696 = vst.msk [vmem:[#allocation2] sm:$0xff] %vm1695_vm4, %v1689_v55 }
 0x281 PF: > { %p2437_p3 = scmp.ne.s32.totalorder %s2876_s16, 1 }
 0x282   : > { %s2896_s10 = smov (!%p2437_p3), 1  }
 0x283   : > { %1701 = sbr.rel (%p2437_p3) target bundleno = 958 (0x3be), region = 44 }
 0x288   : > { %v1702_v56 = vld [vmem:[#allocation2] sm:$0xff]  ;;  %v1704_v57 = vld [vmem:[#allocation3] sm:$0xff]  ;;  %v2894_v61 = vmov 0   ;;  %v2895_v1 = vmov 1   ;;  %v2897_v8 = vmov 1966171168   ;;  %v1736_v11 = vlaneseq }
 0x289   : > { %v1703_v58 = vmul.f32 0.0078125, %v1702_v56  ;;  %v1705_v60 = vmul.f32 0.0078125, %v1704_v57  ;;  %2791 = vset.pattern.permute.xlu0 %v2894_v61  ;;  %2792 = vset.pattern.permute.xlu1 %v2895_v1  ;;  %v1708_v2 = vld [vmem:[%s3556_s2] sm:$0xff]  ;;  %v1734_v10 = vunpack.c.l.s4 %v2897_v8  ;;  %vm1789_vm5 = vcmask 57344  }
 0x28a   : > { %v1737_v15 = vshrl.u32 %v1736_v11, 7 }
 0x28b   : > { %v1706_v62 = vmul.f32 %v1703_v58, %v1703_v58  ;;  %v1735_v13 = vunpack.c.0.s8 %v1734_v10 }
 0x28d   : > { %v1707_v63 = vsub.f32 %v1705_v60, %v1706_v62  ;;  %v3293_v24 = vsub.s32 %v1735_v13, %v1737_v15 }
 0x28f   : > { %v1709_v0 = vadd.f32 1e-05, %v1707_v63 }
 0x291   : > { %2794 = vrsqrt.f32 %v1709_v0 }
 0x29e   : > { %v2795_v3 = vpop.eup %2794 }
 0x29f   : > { %v1711_v4 = vmul.f32 %v2795_v3, %v1708_v2 }
 0x2a1   : > { %v1712_v5 = vmul.f32 %v1711_v4, %v1703_v58 }
 0x2a3   : > { %1714 = vrot.lane.b32.xlu0 %v1712_v5, %s2896_s10 }
 0x2a7   : > { %1720 = vperm.xlu0 %2791, %v1711_v4  }
 0x2ab   : > { %2793 = vset.pattern.permute.xlu0 %v2895_v1 }
 0x315   : > { %v1715_v6 = vpop.permute.xlu0 %1714 }
 0x316   : > { %v1717_v7 = vsub.f32 %v1708_v2, %v1715_v6 }
 0x318   : > { %1726 = vperm.xlu1 %2792, %v1717_v7  }
 0x322   : > { %v1721_v12 = vpop.permute.xlu0 %1720 }
 0x323   : > { %v1723_v16 = vmul.f32 %v1721_v12, %v3224_v40  ;;  %v1798_v17 = vmul.f32 %v1721_v12, %v3226_v59  ;;  %v1867_v18 = vmul.f32 %v1721_v12, %v3228_v14  ;;  %v1936_v19 = vmul.f32 %v1721_v12, %v3230_v33 }
 0x324   : > { %v2005_v20 = vmul.f32 %v1721_v12, %v3232_v53  ;;  %v2074_v21 = vmul.f32 %v1721_v12, %v3234_v9  ;;  %v2143_v22 = vmul.f32 %v1721_v12, %v3236_v29  ;;  %v2212_v23 = vmul.f32 %v1721_v12, %v3238_v50 }
 0x393   : > { %v1727_v25 = vpop.permute.xlu1 %1726 }
 0x394   : > { %v1729_v26 = vadd.f32 %v1727_v25, %v1723_v16  ;;  %v1799_v40 = vadd.f32 %v1798_v17, %v1727_v25  ;;  %v1868_v27 = vadd.f32 %v1867_v18, %v1727_v25  ;;  %v1937_v59 = vadd.f32 %v1936_v19, %v1727_v25 }
 0x395   : > { %v2006_v28 = vadd.f32 %v2005_v20, %v1727_v25  ;;  %v2075_v14 = vadd.f32 %v2074_v21, %v1727_v25  ;;  %v2144_v30 = vadd.f32 %v2143_v22, %v1727_v25  ;;  %v2213_v33 = vadd.f32 %v2212_v23, %v1727_v25 }
 0x396   : > { %v1730_v31 = vmax.f32 %v1729_v26, 0.0  ;;  %v1800_v53 = vmax.f32 %v1799_v40, 0.0  ;;  %v1869_v32 = vmax.f32 %v1868_v27, 0.0  ;;  %v1938_v9 = vmax.f32 %v1937_v59, 0.0 }
 0x397   : > { %v3295_v34 = vmax.f32 %v2006_v28, 0.0  ;;  %v3297_v29 = vmax.f32 %v2075_v14, 0.0  ;;  %v3299_v50 = vmax.f32 %v2144_v30, 0.0  ;;  %v3301_v35 = vmax.f32 %v2213_v33, 0.0 }
 0x398   : > { %v1732_v36 = vcombine.high %v1730_v31, %v1730_v31  ;;  %v1739_v37 = vrot.slane %v1730_v31, %v3293_v24  ;;  %v1802_v38 = vcombine.high %v1800_v53, %v1800_v53  ;;  %v1809_v39 = vrot.slane %v1800_v53, %v3293_v24 }
 0x399   : > { %v1871_v41 = vcombine.high %v1869_v32, %v1869_v32  ;;  %v1878_v42 = vrot.slane %v1869_v32, %v3293_v24  ;;  %v1940_v43 = vcombine.high %v1938_v9, %v1938_v9  ;;  %v1947_v44 = vrot.slane %v1938_v9, %v3293_v24 }
 0x39a   : > { %v1746_v45 = vrot.slane %v1732_v36, %v3293_v24  ;;  %v1747_v46 = vcombine.high %v1739_v37, %v1739_v37  ;;  %v1755_v47 = vrot.slane %v1739_v37, %v3293_v24  ;;  %v1816_v48 = vrot.slane %v1802_v38, %v3293_v24 }
 0x39b   : > { %v1817_v49 = vcombine.high %v1809_v39, %v1809_v39  ;;  %v1825_v51 = vrot.slane %v1809_v39, %v3293_v24  ;;  %v1885_v52 = vrot.slane %v1871_v41, %v3293_v24  ;;  %v1886_v54 = vcombine.high %v1878_v42, %v1878_v42 }
 0x39c   : > { %v1748_v55 = vcombine.high %v1746_v45, %v1746_v45  ;;  %v1762_v56 = vrot.slane %v1746_v45, %v3293_v24  ;;  %v1769_v57 = vrot.slane %v1747_v46, %v3293_v24  ;;  %v1777_v58 = vcombine.high %v1755_v47, %v1755_v47  ;;  %1790 = vst.msk [vmem:[%s3004_s11] sm:$0x1] %vm1789_vm5, %v1755_v47 }
 0x39d   : > { %v1818_v60 = vcombine.high %v1816_v48, %v1816_v48  ;;  %v1832_v61 = vrot.slane %v1816_v48, %v3293_v24  ;;  %v1839_v62 = vrot.slane %v1817_v49, %v3293_v24  ;;  %v1847_v63 = vcombine.high %v1825_v51, %v1825_v51  ;;  %1859 = vst.msk [vmem:[%s3004_s11 + $0x1] sm:$0x1] %vm1789_vm5, %v1825_v51 }
 0x39e   : > { %v1776_v0 = vrot.slane %v1748_v55, %v3293_v24  ;;  %v1778_v1 = vcombine.high %v1762_v56, %v1762_v56  ;;  %v1779_v2 = vcombine.high %v1769_v57, %v1769_v57  ;;  %1791 = vst.msk [vmem:[%s3004_s11 + $0x8] sm:$0x1] %vm1789_vm5, %v1769_v57  ;;  %1792 = vst.msk [vmem:[%s3004_s11 + $0x10] sm:$0x1] %vm1789_vm5, %v1777_v58 }
 0x39f   : > { %1794 = vst.msk [vmem:[%s3004_s11 + $0x20] sm:$0x1] %vm1789_vm5, %v1762_v56  ;;  %v1887_v3 = vcombine.high %v1885_v52, %v1885_v52  ;;  %v1846_v4 = vrot.slane %v1818_v60, %v3293_v24  ;;  %v1848_v5 = vcombine.high %v1832_v61, %v1832_v61  ;;  %v1849_v6 = vcombine.high %v1839_v62, %v1839_v62 }
 0x3a0   : > { %1860 = vst.msk [vmem:[%s3004_s11 + $0x9] sm:$0x1] %vm1789_vm5, %v1839_v62  ;;  %1861 = vst.msk [vmem:[%s3004_s11 + $0x11] sm:$0x1] %vm1789_vm5, %v1847_v63  ;;  %v1894_v7 = vrot.slane %v1878_v42, %v3293_v24  ;;  %v1780_v8 = vcombine.high %v1776_v0, %v1776_v0  ;;  %v1901_v10 = vrot.slane %v1885_v52, %v3293_v24 }
 0x3a1   : > { %1863 = vst.msk [vmem:[%s3004_s11 + $0x21] sm:$0x1] %vm1789_vm5, %v1832_v61  ;;  %1793 = vst.msk [vmem:[%s3004_s11 + $0x18] sm:$0x1] %vm1789_vm5, %v1779_v2  ;;  %v1908_v11 = vrot.slane %v1886_v54, %v3293_v24  ;;  %v1915_v12 = vrot.slane %v1887_v3, %v3293_v24  ;;  %v1850_v13 = vcombine.high %v1846_v4, %v1846_v4 }
 0x3a2   : > { %1795 = vst.msk [vmem:[%s3004_s11 + $0x28] sm:$0x1] %vm1789_vm5, %v1776_v0  ;;  %1796 = vst.msk [vmem:[%s3004_s11 + $0x30] sm:$0x1] %vm1789_vm5, %v1778_v1  ;;  %v1916_v15 = vcombine.high %v1894_v7, %v1894_v7  ;;  %v1954_v16 = vrot.slane %v1940_v43, %v3293_v24  ;;  %v1955_v17 = vcombine.high %v1947_v44, %v1947_v44 }
 0x3a3   : > { %1862 = vst.msk [vmem:[%s3004_s11 + $0x19] sm:$0x1] %vm1789_vm5, %v1849_v6  ;;  %1864 = vst.msk [vmem:[%s3004_s11 + $0x29] sm:$0x1] %vm1789_vm5, %v1846_v4  ;;  %v1917_v18 = vcombine.high %v1901_v10, %v1901_v10  ;;  %v1918_v19 = vcombine.high %v1908_v11, %v1908_v11  ;;  %v1919_v20 = vcombine.high %v1915_v12, %v1915_v12 }
 0x3a4   : > { %1865 = vst.msk [vmem:[%s3004_s11 + $0x31] sm:$0x1] %vm1789_vm5, %v1848_v5  ;;  %1928 = vst.msk [vmem:[%s3004_s11 + $0x2] sm:$0x1] %vm1789_vm5, %v1894_v7  ;;  %v1963_v21 = vrot.slane %v1947_v44, %v3293_v24  ;;  %v1956_v22 = vcombine.high %v1954_v16, %v1954_v16  ;;  %v1970_v23 = vrot.slane %v1954_v16, %v3293_v24 }
 0x3a5   : > { %1797 = vst.msk [vmem:[%s3004_s11 + $0x38] sm:$0x1] %vm1789_vm5, %v1780_v8  ;;  %1929 = vst.msk [vmem:[%s3004_s11 + $0xa] sm:$0x1] %vm1789_vm5, %v1908_v11  ;;  %v1977_v25 = vrot.slane %v1955_v17, %v3293_v24  ;;  %v2009_v26 = vcombine.high %v3295_v34, %v3295_v34  ;;  %v2016_v27 = vrot.slane %v3295_v34, %v3293_v24 }
 0x3a6   : > { %1932 = vst.msk [vmem:[%s3004_s11 + $0x22] sm:$0x1] %vm1789_vm5, %v1901_v10  ;;  %1933 = vst.msk [vmem:[%s3004_s11 + $0x2a] sm:$0x1] %vm1789_vm5, %v1915_v12  ;;  %v1985_v40 = vcombine.high %v1963_v21, %v1963_v21  ;;  %v2078_v59 = vcombine.high %v3297_v29, %v3297_v29  ;;  %v2085_v28 = vrot.slane %v3297_v29, %v3293_v24 }
 0x3a7   : > { %1866 = vst.msk [vmem:[%s3004_s11 + $0x39] sm:$0x1] %vm1789_vm5, %v1850_v13  ;;  %1930 = vst.msk [vmem:[%s3004_s11 + $0x12] sm:$0x1] %vm1789_vm5, %v1916_v15  ;;  %v1984_v14 = vrot.slane %v1956_v22, %v3293_v24  ;;  %v1986_v30 = vcombine.high %v1970_v23, %v1970_v23  ;;  %v1987_v33 = vcombine.high %v1977_v25, %v1977_v25 }
 0x3a8   : > { %1931 = vst.msk [vmem:[%s3004_s11 + $0x1a] sm:$0x1] %vm1789_vm5, %v1918_v19  ;;  %1934 = vst.msk [vmem:[%s3004_s11 + $0x32] sm:$0x1] %vm1789_vm5, %v1917_v18  ;;  %v2023_v31 = vrot.slane %v2009_v26, %v3293_v24  ;;  %v2024_v53 = vcombine.high %v2016_v27, %v2016_v27  ;;  %v2032_v32 = vrot.slane %v2016_v27, %v3293_v24 }
 0x3a9   : > { %1935 = vst.msk [vmem:[%s3004_s11 + $0x3a] sm:$0x1] %vm1789_vm5, %v1919_v20  ;;  %1997 = vst.msk [vmem:[%s3004_s11 + $0x3] sm:$0x1] %vm1789_vm5, %v1963_v21  ;;  %v2092_v9 = vrot.slane %v2078_v59, %v3293_v24  ;;  %v2093_v34 = vcombine.high %v2085_v28, %v2085_v28  ;;  %v1988_v29 = vcombine.high %v1984_v14, %v1984_v14 }
 0x3aa   : > { %1998 = vst.msk [vmem:[%s3004_s11 + $0xb] sm:$0x1] %vm1789_vm5, %v1977_v25  ;;  %2001 = vst.msk [vmem:[%s3004_s11 + $0x23] sm:$0x1] %vm1789_vm5, %v1970_v23  ;;  %v2025_v36 = vcombine.high %v2023_v31, %v2023_v31  ;;  %v2039_v37 = vrot.slane %v2023_v31, %v3293_v24  ;;  %v2101_v38 = vrot.slane %v2085_v28, %v3293_v24 }
 0x3ab   : > { %1999 = vst.msk [vmem:[%s3004_s11 + $0x13] sm:$0x1] %vm1789_vm5, %v1985_v40  ;;  %2000 = vst.msk [vmem:[%s3004_s11 + $0x1b] sm:$0x1] %vm1789_vm5, %v1987_v33  ;;  %v2046_v39 = vrot.slane %v2024_v53, %v3293_v24  ;;  %v2054_v41 = vcombine.high %v2032_v32, %v2032_v32  ;;  %v2094_v42 = vcombine.high %v2092_v9, %v2092_v9 }
 0x3ac   : > { %2002 = vst.msk [vmem:[%s3004_s11 + $0x2b] sm:$0x1] %vm1789_vm5, %v1984_v14  ;;  %2003 = vst.msk [vmem:[%s3004_s11 + $0x33] sm:$0x1] %vm1789_vm5, %v1986_v30  ;;  %v2108_v43 = vrot.slane %v2092_v9, %v3293_v24  ;;  %v2053_v44 = vrot.slane %v2025_v36, %v3293_v24  ;;  %v2055_v45 = vcombine.high %v2039_v37, %v2039_v37 }
 0x3ad   : > { %2066 = vst.msk [vmem:[%s3004_s11 + $0x4] sm:$0x1] %vm1789_vm5, %v2032_v32  ;;  %2004 = vst.msk [vmem:[%s3004_s11 + $0x3b] sm:$0x1] %vm1789_vm5, %v1988_v29  ;;  %v2115_v46 = vrot.slane %v2093_v34, %v3293_v24  ;;  %v2123_v47 = vcombine.high %v2101_v38, %v2101_v38  ;;  %v2056_v48 = vcombine.high %v2046_v39, %v2046_v39 }
 0x3ae   : > { %2070 = vst.msk [vmem:[%s3004_s11 + $0x24] sm:$0x1] %vm1789_vm5, %v2039_v37  ;;  %2135 = vst.msk [vmem:[%s3004_s11 + $0x5] sm:$0x1] %vm1789_vm5, %v2101_v38  ;;  %v2122_v49 = vrot.slane %v2094_v42, %v3293_v24  ;;  %v2124_v51 = vcombine.high %v2108_v43, %v2108_v43  ;;  %v2147_v52 = vcombine.high %v3299_v50, %v3299_v50 }
 0x3af   : > { %2067 = vst.msk [vmem:[%s3004_s11 + $0xc] sm:$0x1] %vm1789_vm5, %v2046_v39  ;;  %2068 = vst.msk [vmem:[%s3004_s11 + $0x14] sm:$0x1] %vm1789_vm5, %v2054_v41  ;;  %v2057_v54 = vcombine.high %v2053_v44, %v2053_v44  ;;  %v2125_v55 = vcombine.high %v2115_v46, %v2115_v46  ;;  %v2154_v56 = vrot.slane %v3299_v50, %v3293_v24 }
 0x3b0   : > { %2139 = vst.msk [vmem:[%s3004_s11 + $0x25] sm:$0x1] %vm1789_vm5, %v2108_v43  ;;  %2071 = vst.msk [vmem:[%s3004_s11 + $0x2c] sm:$0x1] %vm1789_vm5, %v2053_v44  ;;  %v2216_v57 = vcombine.high %v3301_v35, %v3301_v35  ;;  %v2126_v58 = vcombine.high %v2122_v49, %v2122_v49  ;;  %v2161_v60 = vrot.slane %v2147_v52, %v3293_v24 }
 0x3b1   : > { %2072 = vst.msk [vmem:[%s3004_s11 + $0x34] sm:$0x1] %vm1789_vm5, %v2055_v45  ;;  %2136 = vst.msk [vmem:[%s3004_s11 + $0xd] sm:$0x1] %vm1789_vm5, %v2115_v46  ;;  %v2223_v61 = vrot.slane %v3301_v35, %v3293_v24  ;;  %v2162_v50 = vcombine.high %v2154_v56, %v2154_v56  ;;  %v2170_v62 = vrot.slane %v2154_v56, %v3293_v24 }
 0x3b2   : > { %2137 = vst.msk [vmem:[%s3004_s11 + $0x15] sm:$0x1] %vm1789_vm5, %v2123_v47  ;;  %2069 = vst.msk [vmem:[%s3004_s11 + $0x1c] sm:$0x1] %vm1789_vm5, %v2056_v48  ;;  %v2230_v63 = vrot.slane %v2216_v57, %v3293_v24  ;;  %v2163_v0 = vcombine.high %v2161_v60, %v2161_v60  ;;  %v2177_v1 = vrot.slane %v2161_v60, %v3293_v24 }
 0x3b3   : > { %2140 = vst.msk [vmem:[%s3004_s11 + $0x2d] sm:$0x1] %vm1789_vm5, %v2122_v49  ;;  %2141 = vst.msk [vmem:[%s3004_s11 + $0x35] sm:$0x1] %vm1789_vm5, %v2124_v51  ;;  %v2231_v2 = vcombine.high %v2223_v61, %v2223_v61  ;;  %v2239_v35 = vrot.slane %v2223_v61, %v3293_v24  ;;  %v2184_v3 = vrot.slane %v2162_v50, %v3293_v24 }
 0x3b4   : > { %2073 = vst.msk [vmem:[%s3004_s11 + $0x3c] sm:$0x1] %vm1789_vm5, %v2057_v54  ;;  %2138 = vst.msk [vmem:[%s3004_s11 + $0x1d] sm:$0x1] %vm1789_vm5, %v2125_v55  ;;  %v2192_v4 = vcombine.high %v2170_v62, %v2170_v62  ;;  %v2232_v5 = vcombine.high %v2230_v63, %v2230_v63  ;;  %v2246_v6 = vrot.slane %v2230_v63, %v3293_v24 }
 0x3b5   : > { %2142 = vst.msk [vmem:[%s3004_s11 + $0x3d] sm:$0x1] %vm1789_vm5, %v2126_v58  ;;  %2204 = vst.msk [vmem:[%s3004_s11 + $0x6] sm:$0x1] %vm1789_vm5, %v2170_v62  ;;  %v2191_v7 = vrot.slane %v2163_v0, %v3293_v24  ;;  %v2193_v8 = vcombine.high %v2177_v1, %v2177_v1  ;;  %v2253_v10 = vrot.slane %v2231_v2, %v3293_v24 }
 0x3b6   : > { %2208 = vst.msk [vmem:[%s3004_s11 + $0x26] sm:$0x1] %vm1789_vm5, %v2177_v1  ;;  %v2261_v11 = vcombine.high %v2239_v35, %v2239_v35  ;;  %2273 = vst.msk [vmem:[%s3004_s11 + $0x7] sm:$0x1] %vm1789_vm5, %v2239_v35  ;;  %v2194_v12 = vcombine.high %v2184_v3, %v2184_v3  ;;  %v2260_v13 = vrot.slane %v2232_v5, %v3293_v24 }
 0x3b7   : > { %2205 = vst.msk [vmem:[%s3004_s11 + $0xe] sm:$0x1] %vm1789_vm5, %v2184_v3  ;;  %2206 = vst.msk [vmem:[%s3004_s11 + $0x16] sm:$0x1] %vm1789_vm5, %v2192_v4  ;;  %v2262_v15 = vcombine.high %v2246_v6, %v2246_v6  ;;  %v2195_v16 = vcombine.high %v2191_v7, %v2191_v7  ;;  %v2263_v17 = vcombine.high %v2253_v10, %v2253_v10 }
 0x3b8   : > { %2277 = vst.msk [vmem:[%s3004_s11 + $0x27] sm:$0x1] %vm1789_vm5, %v2246_v6  ;;  %2209 = vst.msk [vmem:[%s3004_s11 + $0x2e] sm:$0x1] %vm1789_vm5, %v2191_v7  ;;  %v2264_v18 = vcombine.high %v2260_v13, %v2260_v13 }
 0x3b9   : > { %2210 = vst.msk [vmem:[%s3004_s11 + $0x36] sm:$0x1] %vm1789_vm5, %v2193_v8  ;;  %2274 = vst.msk [vmem:[%s3004_s11 + $0xf] sm:$0x1] %vm1789_vm5, %v2253_v10 }
 0x3ba   : > { %2275 = vst.msk [vmem:[%s3004_s11 + $0x17] sm:$0x1] %vm1789_vm5, %v2261_v11  ;;  %2207 = vst.msk [vmem:[%s3004_s11 + $0x1e] sm:$0x1] %vm1789_vm5, %v2194_v12 }
 0x3bb   : > { %2278 = vst.msk [vmem:[%s3004_s11 + $0x2f] sm:$0x1] %vm1789_vm5, %v2260_v13  ;;  %2279 = vst.msk [vmem:[%s3004_s11 + $0x37] sm:$0x1] %vm1789_vm5, %v2262_v15 }
 0x3bc   : > { %2211 = vst.msk [vmem:[%s3004_s11 + $0x3e] sm:$0x1] %vm1789_vm5, %v2195_v16  ;;  %2276 = vst.msk [vmem:[%s3004_s11 + $0x1f] sm:$0x1] %vm1789_vm5, %v2263_v17 }
 0x3bd   : > { %2280 = vst.msk [vmem:[%s3004_s11 + $0x3f] sm:$0x1] %vm1789_vm5, %v2264_v18 }
 0x3be PF: > { %s2289_s20 = smul.u32 %s2872_s15, %s2876_s16  ;;  %s2296_s21 = sshll.u32 %s3004_s11, 4  ;;  %s3494_s21 = int_to_ptr.vmem [resolvable:$true] %s2296_s21 }
 0x3bf   : > { %s3503_s5 = scalar_lea.sflag [#allocation5], %s175_s4  ;;  %s2796_s6 = scalar_lea.vmem %s3494_s21, 1024 }
 0x3c0   : > { %s2443_s24 = sshll.u32 %s2289_s20, 10  ;;  %p2797_p4 = scmp.ne.s32.totalorder %s3494_s21, %s2796_s6 }
 0x3c1   : > { %s3499_s29 = scalar_lea.hbm %s3557_s3, %s2443_s24  ;;  %s2898_s15 = smov [#allocation4]  }
 0x3c2   : > { %p2798_p5 = pnand %p2797_p4, %p2974_p6  ;;  %s2800_s16 = sshll.u32 %s2898_s15, 4  ;;  %s2801_s16 = int_to_ptr.vmem [resolvable:$false] %s2800_s16 }
 0x3c3   : > { %s2802_s11 = scalar_lea.vmem %s2801_s16, 2048  ;;  %p2803_p9 = scmp.lt.s32.totalorder %s3494_s21, %s2801_s16 }
 0x3c4   : > { %p2799_p7 = pneg %p2798_p5  ;;  %p2804_p10 = scmp.lt.s32.totalorder %s2802_s11, %s2796_s6 }
 0x3c6   : > { %p2805_p11 = por %p2804_p10, %p2803_p9 }
 0x3c8   : > { %p2806_p12 = pnand %p2805_p11, %p2799_p7 }
 0x3ca   : > { %2809 = shalt.err (!%p2806_p12)
}
 0x3cb   : > { %s2810_s4 = scalar_lea.hbm %s3499_s29, 1024  ;;  %s2814_s9 = scalar_lea.hbm %s3557_s3, 2048 }
 0x3cc   : > { %p2811_p13 = scmp.ne.s32.totalorder %s3499_s29, %s2810_s4  ;;  %p2815_p2 = scmp.lt.s32.totalorder %s3499_s29, %s3557_s3 }
 0x3cd   : > { %p2816_p3 = scmp.lt.s32.totalorder %s2814_s9, %s2810_s4 }
 0x3ce   : > { %p2812_p0 = pnand %p2811_p13, %p2974_p6 }
 0x3cf   : > { %p2817_p4 = por %p2816_p3, %p2815_p2 }
 0x3d0   : > { %p2813_p1 = pneg %p2812_p0 }
 0x3d2   : > { %p2818_p5 = pnand %p2817_p4, %p2813_p1 }
 0x3d4   : > { %2821 = shalt.err (!%p2818_p5)
}
 0x3d5   : > { %s2899_s24 = smov 128   ;;  %s2900_s27 = smov 8  }
 0x3d6   : > { %2701 = dma.vmem_to_hbm [thread:$0]  (%p2974_p6), %s3494_s21, 1024, %s3499_s29, %s3503_s5, %s2899_s24, %s2899_s24, %s2900_s27  }
 0x3d7 PF: > { %p2707_p7 = scmp.ge.s32.totalorder %s2888_s19, 2  ;;  %s2311_s28 = sand.u32 1, %s2860_s12  }
 0x3d8   : > { %s2312_s6 = scalar_lea.sflag [#allocation5], %s2311_s28 }
 0x3d9   : > { %p2704_p9 = pnand %p2707_p7, %p2981_p8 }
 0x3db   : > { %p2705_p10 = pneg %p2704_p9 }
 0x3dd   : > { %2855 = dma.done.wait (%p2705_p10), %s2312_s6, 1024  }
 0x3de   : > { %2857 = vsyncadd (%p2705_p10), %s2312_s6, 4294966272  ;;  %s16_s19 = sadd.s32 1, %s2888_s19   ;;  %s3560_s12 = smov %s2864_s13 }
 0x3df   : > { %p13_p11 = scmp.ge.s32.totalorder %s16_s19, 6   ;;  %s3561_s13 = smov %s2868_s14 }
 0x3e0   : > { %s3562_s14 = smov %s2990_s30  ;;  %s3563_s15 = smov %s2880_s17 }
 0x3e1   : > { %s3564_s16 = smov %s2884_s18  ;;  %s3565_s17 = smov %s3568_s22 }
 0x3e2   : > { %s3566_s18 = smov %s3572_s23  ;;  %15 = sbr.rel (!%p13_p11) target bundleno = 5 (0x5), region = 90 }
 0x3e7   :  { %2317 = vsyncpa [#allocation5], 1 }
 0x3e8   :  { %2319 = vsyncpa [#allocation5 + $0x1], 1 }

</bundles_post_ra>
